<compile_context>
chip_gen: v7x
topology: tpu7x:2x2x1
jax: 0.10.0
libtpu: 0.0.40
codegen_flags: <defaults>
</compile_context>

<pallas_src>
import jax
import jax.numpy as jnp
from jax.experimental import pallas as pl
from jax.experimental.pallas import tpu as pltpu

BN_EPS = 1e-5
LEAKY_SLOPE = 0.2
LANE = 128
NCORES = 2          # leading "parallel" grid axis; shards M tiles on v7x's 2 TCs
VMEM_BUDGET = 12 * 1024 * 1024   # per-step footprint cap (v5e scoped default is 16 MiB)


def _round_up(x, m):
    return ((x + m - 1) // m) * m


def _vmem_limit_bytes():
    """Generation-aware scoped-VMEM limit (v5e/v6e: 128 MiB phys, v7x: 64 MiB)."""
    try:
        phys = pltpu.get_tpu_info().vmem_capacity_bytes
        return int(min(phys * 3 // 4, 96 * 1024 * 1024))
    except Exception:
        return None


def _pick_tile_m_conv(m, kd_pad, cout_pad, ncores, budget=VMEM_BUDGET):
    """Largest M tile (multiple of 128) fitting the double-buffered footprint."""
    need = _round_up(-(-m // ncores), 128)        # don't over-tile tiny problems
    for t in (1024, 512, 256, 128):
        if t > max(need, 128):
            continue
        fp = (2 * t * kd_pad * 2            # xcol bf16, double buffered
              + 2 * t * cout_pad * 2        # y bf16 out, double buffered
              + 2 * kd_pad * cout_pad * 2)  # weights (invariant, still 2x buffered)
        if fp <= budget:
            return t
    return 128


def _pick_tile_m_bn(m_pad, cout_pad, budget=VMEM_BUDGET):
    """Pass 2 is elementwise/HBM-bound: use the biggest row tile that divides M_pad."""
    for t in (4096, 2048, 1024, 512, 256, 128):
        if m_pad % t == 0 and 2 * t * cout_pad * (2 + 4) <= budget:
            return t
    return 128


# ---------------------------------------------------------------------------
# Pass 1: conv-as-matmul + shift-centered per-channel stats accumulation.
# ---------------------------------------------------------------------------
def conv_stats_kernel(xcol_ref, w_ref, y_ref, shift_ref, d1_ref, d2_ref):
    # xcol: (TILE_M, Kd_pad) bf16    w: (Kd_pad, Cout_pad) bf16
    # y:    (TILE_M, Cout_pad) bf16  (downcast of the f32 MXU accumulator)
    # shift/d1/d2: (1, 1, Cout_pad) f32 resident blocks, one per core
    #   (grid axis 1 is "arbitrary" -> sequential accumulation per core).
    i = pl.program_id(1)

    y = jnp.dot(xcol_ref[...], w_ref[...], preferred_element_type=jnp.float32)
    y_ref[...] = y.astype(y_ref.dtype)           # bf16 store (halves HBM write)

    @pl.when(i == 0)
    def _init():
        # Per-core shift ~= channel mean of the first tile; exact value is
        # irrelevant for correctness (wrapper corrects padded rows using it),
        # it only conditions the centered sums.
        shift_ref[...] = (jnp.sum(y, axis=0) * (1.0 / y.shape[0])).reshape(1, 1, -1)
        d1_ref[...] = jnp.zeros_like(d1_ref)
        d2_ref[...] = jnp.zeros_like(d2_ref)

    s = shift_ref[...].reshape(1, -1)
    d = y - s                                    # centered -> benign sum-of-squares
    d1_ref[...] += jnp.sum(d, axis=0).reshape(1, 1, -1)
    d2_ref[...] += jnp.sum(d * d, axis=0).reshape(1, 1, -1)


# ---------------------------------------------------------------------------
# Pass 2: folded BN affine + LeakyReLU, fully parallel over (larger) M tiles.
# ---------------------------------------------------------------------------
def bn_lrelu_kernel(y_ref, a_ref, c_ref, o_ref):
    z = y_ref[...].astype(jnp.float32) * a_ref[...] + c_ref[...]
    o_ref[...] = jnp.where(z >= 0, z, LEAKY_SLOPE * z)


@jax.jit
def cnnblock_forward(x_nchw, weight, bias, gamma, beta):
    """x_nchw: (N, Cin, H, W); weight: (Cout, Cin, K, K) (PyTorch layout).

    `bias` is accepted (module parameter) but unused: training-mode BN
    subtracts the batch mean, which algebraically cancels a pre-BN bias.
    (If the block is ever run with running stats / eval mode, reinstate it.)
    """
    del bias
    Cout, Cin, K, _ = weight.shape
    N, _, H, W = x_nchw.shape
    OH, OW = H - K + 1, W - K + 1
    M = N * OH * OW
    Kd = Cin * K * K
    Kd_pad = _round_up(Kd, LANE)
    Cout_pad = _round_up(Cout, LANE)

    vmem_limit = _vmem_limit_bytes()
    TILE_M = _pick_tile_m_conv(M, Kd_pad, Cout_pad, NCORES)
    M_pad = _round_up(M, NCORES * TILE_M)
    TPC = M_pad // (NCORES * TILE_M)             # tiles per core

    # ---- im2col in NHWC, rows flattened in (Cin, kh, kw) order to match the
    #      PyTorch (Cout, Cin, kh, kw) weight flattening. bf16 inputs to MXU.
    # TODO(synk): extract the KxK patches in-kernel from an NHWC VMEM tile
    # (halo DMA between row tiles) to remove this K^2 im2col HBM inflation.
    x_nhwc = jnp.transpose(x_nchw, (0, 2, 3, 1))
    patches = [x_nhwc[:, i:i + OH, j:j + OW, :]
               for i in range(K) for j in range(K)]
    xcol = jnp.stack(patches, axis=-1).reshape(M, Kd)
    xcol = jnp.pad(xcol, ((0, M_pad - M), (0, Kd_pad - Kd))).astype(jnp.bfloat16)
    wmat = weight.reshape(Cout, Kd).T                              # (Kd, Cout)
    wmat = jnp.pad(wmat, ((0, Kd_pad - Kd), (0, Cout_pad - Cout))).astype(jnp.bfloat16)

    cost = pl.CostEstimate(
        flops=2 * M_pad * Kd_pad * Cout_pad,
        transcendentals=0,
        bytes_accessed=(M_pad * Kd_pad * 2 + Kd_pad * Cout_pad * 2
                        + M_pad * Cout_pad * 2 + 3 * NCORES * Cout_pad * 4),
    )

    y, shift, d1, d2 = pl.pallas_call(
        conv_stats_kernel,
        out_shape=(
            jax.ShapeDtypeStruct((M_pad, Cout_pad), jnp.bfloat16),
            jax.ShapeDtypeStruct((NCORES, 1, Cout_pad), jnp.float32),
            jax.ShapeDtypeStruct((NCORES, 1, Cout_pad), jnp.float32),
            jax.ShapeDtypeStruct((NCORES, 1, Cout_pad), jnp.float32),
        ),
        grid=(NCORES, TPC),
        in_specs=[
            pl.BlockSpec((TILE_M, Kd_pad), lambda c, i: (c * TPC + i, 0)),
            pl.BlockSpec((Kd_pad, Cout_pad), lambda c, i: (0, 0)),
        ],
        out_specs=(
            pl.BlockSpec((TILE_M, Cout_pad), lambda c, i: (c * TPC + i, 0)),
            pl.BlockSpec((1, 1, Cout_pad), lambda c, i: (c, 0, 0)),
            pl.BlockSpec((1, 1, Cout_pad), lambda c, i: (c, 0, 0)),
            pl.BlockSpec((1, 1, Cout_pad), lambda c, i: (c, 0, 0)),
        ),
        compiler_params=pltpu.CompilerParams(
            dimension_semantics=("parallel", "arbitrary"),
            vmem_limit_bytes=vmem_limit),
        cost_estimate=cost,
    )(xcol, wmat)

    # ---- combine per-core shift-centered partials into exact batch stats.
    shift = shift[:, 0, :]
    d1 = d1[:, 0, :]
    d2 = d2[:, 0, :]
    span = float(TPC * TILE_M)                               # rows per core (padded)
    core_start = jnp.arange(NCORES, dtype=jnp.float32)[:, None] * span
    n_c = jnp.clip(jnp.float32(M) - core_start, 0.0, span)   # valid rows per core
    p_c = span - n_c                                         # zero-padded rows
    # Padded rows contributed exactly (0 - shift) / shift^2 to d1 / d2.
    d1v = d1 + p_c * shift
    d2v = d2 - p_c * shift * shift
    safe_n = jnp.maximum(n_c, 1.0)
    mean_c = jnp.where(n_c > 0, shift + d1v / safe_n, 0.0)
    m2_c = jnp.where(n_c > 0, d2v - d1v * d1v / safe_n, 0.0)
    inv_m = 1.0 / M
    mean = jnp.sum(n_c * mean_c, axis=0) * inv_m
    m2 = jnp.sum(m2_c + n_c * (mean_c - mean[None, :]) ** 2, axis=0)
    var = jnp.maximum(m2 * inv_m, 0.0)                       # biased, as BN training

    gamma_p = jnp.pad(gamma.astype(jnp.float32), (0, Cout_pad - Cout))
    beta_p = jnp.pad(beta.astype(jnp.float32), (0, Cout_pad - Cout))
    a = gamma_p * jax.lax.rsqrt(var + BN_EPS)
    c = beta_p - mean * a

    # ---- pass 2: BN affine + LeakyReLU with its own, larger row tiling.
    TILE_M2 = _pick_tile_m_bn(M_pad, Cout_pad)
    out_flat = pl.pallas_call(
        bn_lrelu_kernel,
        out_shape=jax.ShapeDtypeStruct((M_pad, Cout_pad), jnp.float32),
        grid=(M_pad // TILE_M2,),
        in_specs=[
            pl.BlockSpec((TILE_M2, Cout_pad), lambda i: (i, 0)),
            pl.BlockSpec((1, Cout_pad), lambda i: (0, 0)),
            pl.BlockSpec((1, Cout_pad), lambda i: (0, 0)),
        ],
        out_specs=pl.BlockSpec((TILE_M2, Cout_pad), lambda i: (i, 0)),
        compiler_params=pltpu.CompilerParams(
            dimension_semantics=("parallel",),
            vmem_limit_bytes=vmem_limit),
    )(y, a.reshape(1, Cout_pad), c.reshape(1, Cout_pad))

    out = out_flat[:M, :Cout].reshape(N, OH, OW, Cout)
    return jnp.transpose(out, (0, 3, 1, 2))                  # back to NCHW


# ---------------------------------------------------------------------------
# Plain-JAX references for the sanity check.
# ---------------------------------------------------------------------------
def reference_forward(x_nchw, weight, bias, gamma, beta,
                      input_dtype=jnp.float32):
    x = x_nchw.astype(input_dtype).astype(jnp.float32)
    w = weight.astype(input_dtype).astype(jnp.float32)
    y = jax.lax.conv_general_dilated(
        x, w, window_strides=(1, 1), padding="VALID",
        dimension_numbers=("NCHW", "OIHW", "NCHW"))
    y = y + bias[None, :, None, None]
    mean = jnp.mean(y, axis=(0, 2, 3), keepdims=True)
    var = jnp.mean((y - mean) ** 2, axis=(0, 2, 3), keepdims=True)
    y_hat = (y - mean) * jax.lax.rsqrt(var + BN_EPS)
    z = gamma[None, :, None, None] * y_hat + beta[None, :, None, None]
    return jnp.where(z >= 0, z, LEAKY_SLOPE * z)


if __name__ == "__main__":
    key = jax.random.PRNGKey(0)
    k_x, k_w, k_b, k_g, k_be = jax.random.split(key, 5)

    N, Cin, H, W = 2, 4, 16, 16
    Cout, K = 8, 3

    x = jax.random.normal(k_x, (N, Cin, H, W), dtype=jnp.float32)
    weight = jax.random.normal(k_w, (Cout, Cin, K, K), dtype=jnp.float32) * 0.1
    bias = jax.random.normal(k_b, (Cout,), dtype=jnp.float32) * 0.1
    gamma = 1.0 + 0.1 * jax.random.normal(k_g, (Cout,), dtype=jnp.float32)
    beta = 0.1 * jax.random.normal(k_be, (Cout,), dtype=jnp.float32)

    out = jax.block_until_ready(cnnblock_forward(x, weight, bias, gamma, beta))
    assert out.shape == (N, Cout, H - K + 1, W - K + 1)

    # Check vs a reference whose conv inputs are quantized to bf16 like the
    # kernel's MXU inputs (remaining gap: summation order + the bf16 storage
    # of the conv intermediate before the BN affine).
    ref_q = jax.block_until_ready(
        reference_forward(x, weight, bias, gamma, beta,
                          input_dtype=jnp.bfloat16))
    assert jnp.allclose(out, ref_q, atol=1e-2, rtol=1e-2)

    # Loose check vs the pure-f32 reference (gap = expected bf16 quantization
    # of the MXU inputs and of the stored conv intermediate).
    ref_f32 = jax.block_until_ready(
        reference_forward(x, weight, bias, gamma, beta))
    assert jnp.allclose(out, ref_f32, atol=1e-1, rtol=1e-1)

    print("KERNEL_OK")
</pallas_src>

<mosaic_0001>
module attributes {stable_mosaic.version = 11 : i64} {
  func.func @conv_stats_kernel(%arg0: i32, %arg1: i32, %arg2: memref<256x128xbf16, #tpu.memory_space<vmem>>, %arg3: memref<128x128xbf16, #tpu.memory_space<vmem>>, %arg4: memref<256x128xbf16, #tpu.memory_space<vmem>>, %arg5: memref<1x1x128xf32, #tpu.memory_space<vmem>>, %arg6: memref<1x1x128xf32, #tpu.memory_space<vmem>>, %arg7: memref<1x1x128xf32, #tpu.memory_space<vmem>>) attributes {dimension_semantics = [#tpu.dimension_semantics<parallel>, #tpu.dimension_semantics<arbitrary>], iteration_bounds = array<i64: 2, 1>, scalar_prefetch = 0 : i64, scratch_operands = 0 : i64, tpu.core_type = #tpu.core_type<tc>, window_params = [{transform_indices = @transform_0, window_bounds = array<i64: 256, 128>}, {pipeline_mode = #tpu.pipeline_mode<synchronous>, transform_indices = @transform_1, window_bounds = array<i64: 128, 128>}, {transform_indices = @transform_2, window_bounds = array<i64: 256, 128>}, {transform_indices = @transform_3, window_bounds = array<i64: 1, 1, 128>}, {transform_indices = @transform_4, window_bounds = array<i64: 1, 1, 128>}, {transform_indices = @transform_5, window_bounds = array<i64: 1, 1, 128>}]} {
    %c0 = arith.constant 0 : index
    %c0_0 = arith.constant 0 : index
    %0 = vector.load %arg2[%c0, %c0_0] : memref<256x128xbf16, #tpu.memory_space<vmem>>, vector<256x128xbf16>
    %c0_1 = arith.constant 0 : index
    %c0_2 = arith.constant 0 : index
    %1 = vector.load %arg3[%c0_1, %c0_2] : memref<128x128xbf16, #tpu.memory_space<vmem>>, vector<128x128xbf16>
    %cst = arith.constant dense<0.000000e+00> : vector<256x128xf32>
    %2 = tpu.matmul %0, %1, %cst {dimension_numbers = #tpu.dot_dimension_numbers<[1], [0], [0], [1], [0, 0, 1, 1], [], []>} : vector<256x128xbf16>, vector<128x128xbf16>, vector<256x128xf32> -> vector<256x128xf32>
    %3 = arith.truncf %2 : vector<256x128xf32> to vector<256x128xbf16>
    %c0_3 = arith.constant 0 : index
    %c0_4 = arith.constant 0 : index
    %4 = vector.load %arg4[%c0_3, %c0_4] : memref<256x128xbf16, #tpu.memory_space<vmem>>, vector<256x128xbf16>
    tpu.vector_store %arg4[%c0_3, %c0_4], %3 {strides = array<i32>} : memref<256x128xbf16, #tpu.memory_space<vmem>>, vector<256x128xbf16>,
    %c0_i32 = arith.constant 0 : i32
    %5 = arith.cmpi eq, %arg1, %c0_i32 : i32
    %6 = arith.extui %5 : i1 to i32
    %c0_i32_5 = arith.constant 0 : i32
    %7 = arith.cmpi ne, %6, %c0_i32_5 : i32
    scf.if %7 {
      %cst_23 = arith.constant dense<0.000000e+00> : vector<128xf32>
      %23 = vector.multi_reduction <add>, %2, %cst_23 [0] : vector<256x128xf32> to vector<128xf32>
      %cst_24 = arith.constant 3.906250e-03 : f32
      %24 = vector.broadcast %cst_24 : f32 to vector<128xf32>
      %25 = arith.mulf %23, %24 : vector<128xf32>
      %26 = vector.shape_cast %25 : vector<128xf32> to vector<1x1x128xf32>
      %c0_25 = arith.constant 0 : index
      %c0_26 = arith.constant 0 : index
      %c0_27 = arith.constant 0 : index
      %27 = vector.load %arg5[%c0_25, %c0_26, %c0_27] : memref<1x1x128xf32, #tpu.memory_space<vmem>>, vector<1x1x128xf32>
      tpu.vector_store %arg5[%c0_25, %c0_26, %c0_27], %26 {strides = array<i32>} : memref<1x1x128xf32, #tpu.memory_space<vmem>>, vector<1x1x128xf32>,
      %cst_28 = arith.constant 0.000000e+00 : f32
      %28 = vector.broadcast %cst_28 : f32 to vector<1x1x128xf32>
      %c0_29 = arith.constant 0 : index
      %c0_30 = arith.constant 0 : index
      %c0_31 = arith.constant 0 : index
      %29 = vector.load %arg6[%c0_29, %c0_30, %c0_31] : memref<1x1x128xf32, #tpu.memory_space<vmem>>, vector<1x1x128xf32>
      tpu.vector_store %arg6[%c0_29, %c0_30, %c0_31], %28 {strides = array<i32>} : memref<1x1x128xf32, #tpu.memory_space<vmem>>, vector<1x1x128xf32>,
      %cst_32 = arith.constant 0.000000e+00 : f32
      %30 = vector.broadcast %cst_32 : f32 to vector<1x1x128xf32>
      %c0_33 = arith.constant 0 : index
      %c0_34 = arith.constant 0 : index
      %c0_35 = arith.constant 0 : index
      %31 = vector.load %arg7[%c0_33, %c0_34, %c0_35] : memref<1x1x128xf32, #tpu.memory_space<vmem>>, vector<1x1x128xf32>
      tpu.vector_store %arg7[%c0_33, %c0_34, %c0_35], %30 {strides = array<i32>} : memref<1x1x128xf32, #tpu.memory_space<vmem>>, vector<1x1x128xf32>,
    } else {
    }
    %c0_6 = arith.constant 0 : index
    %c0_7 = arith.constant 0 : index
    %c0_8 = arith.constant 0 : index
    %8 = vector.load %arg5[%c0_6, %c0_7, %c0_8] : memref<1x1x128xf32, #tpu.memory_space<vmem>>, vector<1x1x128xf32>
    %9 = vector.shape_cast %8 : vector<1x1x128xf32> to vector<1x128xf32>
    %10 = vector.broadcast %9 : vector<1x128xf32> to vector<256x128xf32>
    %11 = arith.subf %2, %10 : vector<256x128xf32>
    %c0_9 = arith.constant 0 : index
    %c0_10 = arith.constant 0 : index
    %c0_11 = arith.constant 0 : index
    %12 = vector.load %arg6[%c0_9, %c0_10, %c0_11] : memref<1x1x128xf32, #tpu.memory_space<vmem>>, vector<1x1x128xf32>
    %cst_12 = arith.constant dense<0.000000e+00> : vector<128xf32>
    %13 = vector.multi_reduction <add>, %11, %cst_12 [0] : vector<256x128xf32> to vector<128xf32>
    %14 = vector.shape_cast %13 : vector<128xf32> to vector<1x1x128xf32>
    %15 = arith.addf %12, %14 : vector<1x1x128xf32>
    %c0_13 = arith.constant 0 : index
    %c0_14 = arith.constant 0 : index
    %c0_15 = arith.constant 0 : index
    %16 = vector.load %arg6[%c0_13, %c0_14, %c0_15] : memref<1x1x128xf32, #tpu.memory_space<vmem>>, vector<1x1x128xf32>
    tpu.vector_store %arg6[%c0_13, %c0_14, %c0_15], %15 {strides = array<i32>} : memref<1x1x128xf32, #tpu.memory_space<vmem>>, vector<1x1x128xf32>,
    %c0_16 = arith.constant 0 : index
    %c0_17 = arith.constant 0 : index
    %c0_18 = arith.constant 0 : index
    %17 = vector.load %arg7[%c0_16, %c0_17, %c0_18] : memref<1x1x128xf32, #tpu.memory_space<vmem>>, vector<1x1x128xf32>
    %18 = arith.mulf %11, %11 : vector<256x128xf32>
    %cst_19 = arith.constant dense<0.000000e+00> : vector<128xf32>
    %19 = vector.multi_reduction <add>, %18, %cst_19 [0] : vector<256x128xf32> to vector<128xf32>
    %20 = vector.shape_cast %19 : vector<128xf32> to vector<1x1x128xf32>
    %21 = arith.addf %17, %20 : vector<1x1x128xf32>
    %c0_20 = arith.constant 0 : index
    %c0_21 = arith.constant 0 : index
    %c0_22 = arith.constant 0 : index
    %22 = vector.load %arg7[%c0_20, %c0_21, %c0_22] : memref<1x1x128xf32, #tpu.memory_space<vmem>>, vector<1x1x128xf32>
    tpu.vector_store %arg7[%c0_20, %c0_21, %c0_22], %21 {strides = array<i32>} : memref<1x1x128xf32, #tpu.memory_space<vmem>>, vector<1x1x128xf32>,
    return
  }
  func.func @transform_0(%arg0: i32, %arg1: i32) -> (i32, i32) {
    %c1_i32 = arith.constant 1 : i32
    %0 = arith.muli %arg0, %c1_i32 : i32
    %1 = arith.addi %0, %arg1 : i32
    %c0_i32 = arith.constant 0 : i32
    %c0_i32_0 = arith.constant 0 : i32
    return %1, %c0_i32 : i32, i32
  }
  func.func @transform_1(%arg0: i32, %arg1: i32) -> (i32, i32) {
    %c0_i32 = arith.constant 0 : i32
    %c0_i32_0 = arith.constant 0 : i32
    %c0_i32_1 = arith.constant 0 : i32
    return %c0_i32, %c0_i32_0 : i32, i32
  }
  func.func @transform_2(%arg0: i32, %arg1: i32) -> (i32, i32) {
    %c1_i32 = arith.constant 1 : i32
    %0 = arith.muli %arg0, %c1_i32 : i32
    %1 = arith.addi %0, %arg1 : i32
    %c0_i32 = arith.constant 0 : i32
    %c0_i32_0 = arith.constant 0 : i32
    return %1, %c0_i32 : i32, i32
  }
  func.func @transform_3(%arg0: i32, %arg1: i32) -> (i32, i32, i32) {
    %c0_i32 = arith.constant 0 : i32
    %c0_i32_0 = arith.constant 0 : i32
    %c0_i32_1 = arith.constant 0 : i32
    return %arg0, %c0_i32, %c0_i32_0 : i32, i32, i32
  }
  func.func @transform_4(%arg0: i32, %arg1: i32) -> (i32, i32, i32) {
    %c0_i32 = arith.constant 0 : i32
    %c0_i32_0 = arith.constant 0 : i32
    %c0_i32_1 = arith.constant 0 : i32
    return %arg0, %c0_i32, %c0_i32_0 : i32, i32, i32
  }
  func.func @transform_5(%arg0: i32, %arg1: i32) -> (i32, i32, i32) {
    %c0_i32 = arith.constant 0 : i32
    %c0_i32_0 = arith.constant 0 : i32
    %c0_i32_1 = arith.constant 0 : i32
    return %arg0, %c0_i32, %c0_i32_0 : i32, i32, i32
  }
}

module attributes {stable_mosaic.version = 11 : i64} {
  func.func @bn_lrelu_kernel(%arg0: i32, %arg1: memref<512x128xbf16, #tpu.memory_space<vmem>>, %arg2: memref<1x128xf32, #tpu.memory_space<vmem>>, %arg3: memref<1x128xf32, #tpu.memory_space<vmem>>, %arg4: memref<512x128xf32, #tpu.memory_space<vmem>>) attributes {dimension_semantics = [#tpu.dimension_semantics<parallel>], iteration_bounds = array<i64: 1>, scalar_prefetch = 0 : i64, scratch_operands = 0 : i64, tpu.core_type = #tpu.core_type<tc>, window_params = [{transform_indices = @transform_0, window_bounds = array<i64: 512, 128>}, {pipeline_mode = #tpu.pipeline_mode<synchronous>, transform_indices = @transform_1, window_bounds = array<i64: 1, 128>}, {pipeline_mode = #tpu.pipeline_mode<synchronous>, transform_indices = @transform_2, window_bounds = array<i64: 1, 128>}, {transform_indices = @transform_3, window_bounds = array<i64: 512, 128>}]} {
    %c0 = arith.constant 0 : index
    %c0_0 = arith.constant 0 : index
    %0 = vector.load %arg1[%c0, %c0_0] : memref<512x128xbf16, #tpu.memory_space<vmem>>, vector<512x128xbf16>
    %1 = arith.extf %0 : vector<512x128xbf16> to vector<512x128xf32>
    %c0_1 = arith.constant 0 : index
    %c0_2 = arith.constant 0 : index
    %2 = vector.load %arg2[%c0_1, %c0_2] : memref<1x128xf32, #tpu.memory_space<vmem>>, vector<1x128xf32>
    %3 = vector.broadcast %2 : vector<1x128xf32> to vector<512x128xf32>
    %4 = arith.mulf %1, %3 : vector<512x128xf32>
    %c0_3 = arith.constant 0 : index
    %c0_4 = arith.constant 0 : index
    %5 = vector.load %arg3[%c0_3, %c0_4] : memref<1x128xf32, #tpu.memory_space<vmem>>, vector<1x128xf32>
    %6 = vector.broadcast %5 : vector<1x128xf32> to vector<512x128xf32>
    %7 = arith.addf %4, %6 : vector<512x128xf32>
    %cst = arith.constant 0.000000e+00 : f32
    %8 = vector.broadcast %cst : f32 to vector<512x128xf32>
    %9 = arith.cmpf oge, %7, %8 : vector<512x128xf32>
    %cst_5 = arith.constant 2.000000e-01 : f32
    %10 = vector.broadcast %cst_5 : f32 to vector<512x128xf32>
    %11 = arith.mulf %10, %7 : vector<512x128xf32>
    %12 = arith.select %9, %7, %11 : vector<512x128xi1>, vector<512x128xf32>
    %c0_6 = arith.constant 0 : index
    %c0_7 = arith.constant 0 : index
    %13 = vector.load %arg4[%c0_6, %c0_7] : memref<512x128xf32, #tpu.memory_space<vmem>>, vector<512x128xf32>
    tpu.vector_store %arg4[%c0_6, %c0_7], %12 {strides = array<i32>} : memref<512x128xf32, #tpu.memory_space<vmem>>, vector<512x128xf32>,
    return
  }
  func.func @transform_0(%arg0: i32) -> (i32, i32) {
    %c0_i32 = arith.constant 0 : i32
    %c0_i32_0 = arith.constant 0 : i32
    return %arg0, %c0_i32 : i32, i32
  }
  func.func @transform_1(%arg0: i32) -> (i32, i32) {
    %c0_i32 = arith.constant 0 : i32
    %c0_i32_0 = arith.constant 0 : i32
    %c0_i32_1 = arith.constant 0 : i32
    return %c0_i32, %c0_i32_0 : i32, i32
  }
  func.func @transform_2(%arg0: i32) -> (i32, i32) {
    %c0_i32 = arith.constant 0 : i32
    %c0_i32_0 = arith.constant 0 : i32
    %c0_i32_1 = arith.constant 0 : i32
    return %c0_i32, %c0_i32_0 : i32, i32
  }
  func.func @transform_3(%arg0: i32) -> (i32, i32) {
    %c0_i32 = arith.constant 0 : i32
    %c0_i32_0 = arith.constant 0 : i32
    return %arg0, %c0_i32 : i32, i32
  }
}

</mosaic_0001>

<bundles_post_ra>
// kernel: cnnblock_forward.3
= control target key start
LH: loop header
LB: loop body
LE: loop exit
PB: predicated region body
PF: predicated region fallthrough
CT: control target
= control target key end

     0   :  { %s1151_s0 = inlined_call_operand.vmem [shape: bf16[512,128], index: 0, kind: input, shape index: {}]   ;;  %s1152_s1 = inlined_call_operand.vmem [shape: f32[1,128], index: 1, kind: input, shape index: {}]   ;;  %s1153_s2 = inlined_call_operand.vmem [shape: f32[1,128], index: 2, kind: input, shape index: {}]   ;;  %s1154_s3 = inlined_call_operand.vmem [shape: f32[512,128], index: 3, kind: output, shape index: {}]  }
   0x1   :  { %v547_v0 = vld [vmem:[%s1151_s0] sm:$0xff]   ;;  %v674_v4 = vld [vmem:[%s1151_s0 + $0x8] sm:$0xff]   ;;  %v675_v5 = vld [vmem:[%s1151_s0 + $0x10] sm:$0xff]  }
   0x2   :  { %v731_v1 = vld [vmem:[%s1152_s1] ss:$0 sm:$0xff]  ;;  %v548_v2 = vunpack.c.l.bf16 %v547_v0  ;;  %v549_v3 = vunpack.c.h.bf16 %v547_v0  ;;  %v676_v6 = vld [vmem:[%s1151_s0 + $0x18] sm:$0xff]   ;;  %v552_v8 = vunpack.c.l.bf16 %v674_v4  ;;  %v553_v9 = vunpack.c.h.bf16 %v674_v4  ;;  %v678_v36 = vld [vmem:[%s1151_s0 + $0x28] sm:$0xff]  }
   0x3   :  { %v745_v7 = vld [vmem:[%s1153_s2] ss:$0 sm:$0xff]  ;;  %v556_v10 = vunpack.c.l.bf16 %v675_v5  ;;  %v557_v11 = vunpack.c.h.bf16 %v675_v5  ;;  %v560_v14 = vunpack.c.l.bf16 %v676_v6  ;;  %v561_v15 = vunpack.c.h.bf16 %v676_v6  ;;  %v679_v48 = vld [vmem:[%s1151_s0 + $0x30] sm:$0xff]   ;;  %v680_v55 = vld [vmem:[%s1151_s0 + $0x38] sm:$0xff]  }
   0x4   :  { %v149_v12 = vmul.f32 %v548_v2, %v731_v1  ;;  %v150_v13 = vmul.f32 %v549_v3, %v731_v1  ;;  %v151_v16 = vmul.f32 %v552_v8, %v731_v1  ;;  %v152_v17 = vmul.f32 %v553_v9, %v731_v1  ;;  %v677_v28 = vld [vmem:[%s1151_s0 + $0x20] sm:$0xff]  }
   0x5   :  { %v153_v18 = vmul.f32 %v556_v10, %v731_v1  ;;  %v154_v19 = vmul.f32 %v557_v11, %v731_v1  ;;  %v155_v22 = vmul.f32 %v560_v14, %v731_v1  ;;  %v156_v23 = vmul.f32 %v561_v15, %v731_v1  ;;  %v681_v14 = vld [vmem:[%s1151_s0 + $0x40] sm:$0xff]  }
   0x6   :  { %v220_v20 = vadd.f32 %v745_v7, %v149_v12  ;;  %v221_v21 = vadd.f32 %v745_v7, %v150_v13  ;;  %v222_v24 = vadd.f32 %v745_v7, %v151_v16  ;;  %v223_v25 = vadd.f32 %v745_v7, %v152_v17 }
   0x7   :  { %v224_v26 = vadd.f32 %v745_v7, %v153_v18  ;;  %v225_v27 = vadd.f32 %v745_v7, %v154_v19  ;;  %v226_v41 = vadd.f32 %v745_v7, %v155_v22  ;;  %v227_v42 = vadd.f32 %v745_v7, %v156_v23  ;;  %v682_v19 = vld [vmem:[%s1151_s0 + $0x48] sm:$0xff]  }
   0x8   :  { %vm284_vm0 = vcmp.ge.f32.partialorder %v220_v20, 0.0  ;;  %v348_v29 = vmul.f32 0.2, %v220_v20  ;;  %vm285_vm1 = vcmp.ge.f32.partialorder %v221_v21, 0.0  ;;  %v349_v30 = vmul.f32 0.2, %v221_v21 }
   0x9   :  { %vm286_vm2 = vcmp.ge.f32.partialorder %v222_v24, 0.0  ;;  %v350_v31 = vmul.f32 0.2, %v222_v24  ;;  %vm287_vm3 = vcmp.ge.f32.partialorder %v223_v25, 0.0  ;;  %v351_v32 = vmul.f32 0.2, %v223_v25 }
   0xa   :  { %v412_v33 = vsel %vm284_vm0, %v220_v20, %v348_v29  ;;  %v413_v34 = vsel %vm285_vm1, %v221_v21, %v349_v30  ;;  %vm288_vm4 = vcmp.ge.f32.partialorder %v224_v26, 0.0  ;;  %v352_v35 = vmul.f32 0.2, %v224_v26  ;;  %v683_v30 = vld [vmem:[%s1151_s0 + $0x50] sm:$0xff]  }
   0xb   :  { %476 = vst [vmem:[%s1154_s3] sm:$0xff] %v412_v33  ;;  %477 = vst [vmem:[%s1154_s3 + $0x8] sm:$0xff] %v413_v34  ;;  %v414_v37 = vsel %vm286_vm2, %v222_v24, %v350_v31  ;;  %v415_v38 = vsel %vm287_vm3, %v223_v25, %v351_v32  ;;  %vm289_vm5 = vcmp.ge.f32.partialorder %v225_v27, 0.0  ;;  %v353_v39 = vmul.f32 0.2, %v225_v27 }
   0xc   :  { %478 = vst [vmem:[%s1154_s3 + $0x10] sm:$0xff] %v414_v37  ;;  %479 = vst [vmem:[%s1154_s3 + $0x18] sm:$0xff] %v415_v38  ;;  %v416_v40 = vsel %vm288_vm4, %v224_v26, %v352_v35  ;;  %v564_v43 = vunpack.c.l.bf16 %v677_v28  ;;  %v565_v45 = vunpack.c.h.bf16 %v677_v28  ;;  %v568_v46 = vunpack.c.l.bf16 %v678_v36  ;;  %v684_v37 = vld [vmem:[%s1151_s0 + $0x58] sm:$0xff]  }
   0xd   :  { %480 = vst [vmem:[%s1154_s3 + $0x20] sm:$0xff] %v416_v40  ;;  %v417_v44 = vsel %vm289_vm5, %v225_v27, %v353_v39  ;;  %v569_v47 = vunpack.c.h.bf16 %v678_v36  ;;  %vm290_vm6 = vcmp.ge.f32.partialorder %v226_v41, 0.0  ;;  %v354_v49 = vmul.f32 0.2, %v226_v41 }
   0xe   :  { %481 = vst [vmem:[%s1154_s3 + $0x28] sm:$0xff] %v417_v44  ;;  %vm291_vm7 = vcmp.ge.f32.partialorder %v227_v42, 0.0  ;;  %v355_v50 = vmul.f32 0.2, %v227_v42  ;;  %v157_v51 = vmul.f32 %v564_v43, %v731_v1  ;;  %v158_v52 = vmul.f32 %v565_v45, %v731_v1 }
   0xf   :  { %v159_v53 = vmul.f32 %v568_v46, %v731_v1  ;;  %v160_v54 = vmul.f32 %v569_v47, %v731_v1  ;;  %v418_v56 = vsel %vm290_vm6, %v226_v41, %v354_v49  ;;  %v572_v58 = vunpack.c.l.bf16 %v679_v48 }
  0x10   :  { %v419_v57 = vsel %vm291_vm7, %v227_v42, %v355_v50  ;;  %v573_v59 = vunpack.c.h.bf16 %v679_v48  ;;  %482 = vst [vmem:[%s1154_s3 + $0x30] sm:$0xff] %v418_v56  ;;  %v228_v60 = vadd.f32 %v745_v7, %v157_v51  ;;  %v229_v61 = vadd.f32 %v745_v7, %v158_v52 }
  0x11   :  { %483 = vst [vmem:[%s1154_s3 + $0x38] sm:$0xff] %v419_v57  ;;  %v230_v62 = vadd.f32 %v745_v7, %v159_v53  ;;  %v231_v63 = vadd.f32 %v745_v7, %v160_v54  ;;  %v161_v0 = vmul.f32 %v572_v58, %v731_v1  ;;  %v576_v3 = vunpack.c.l.bf16 %v680_v55  ;;  %v685_v58 = vld [vmem:[%s1151_s0 + $0x60] sm:$0xff]  }
  0x12   :  { %v162_v2 = vmul.f32 %v573_v59, %v731_v1  ;;  %v577_v4 = vunpack.c.h.bf16 %v680_v55  ;;  %vm292_vm8 = vcmp.ge.f32.partialorder %v228_v60, 0.0  ;;  %v356_v5 = vmul.f32 0.2, %v228_v60 }
  0x13   :  { %vm293_vm9 = vcmp.ge.f32.partialorder %v229_v61, 0.0  ;;  %v357_v6 = vmul.f32 0.2, %v229_v61  ;;  %vm294_vm10 = vcmp.ge.f32.partialorder %v230_v62, 0.0  ;;  %v358_v8 = vmul.f32 0.2, %v230_v62 }
  0x14   :  { %vm295_vm11 = vcmp.ge.f32.partialorder %v231_v63, 0.0  ;;  %v359_v9 = vmul.f32 0.2, %v231_v63  ;;  %v420_v10 = vsel %vm292_vm8, %v228_v60, %v356_v5  ;;  %v232_v12 = vadd.f32 %v745_v7, %v161_v0 }
  0x15   :  { %v421_v11 = vsel %vm293_vm9, %v229_v61, %v357_v6  ;;  %v233_v13 = vadd.f32 %v745_v7, %v162_v2  ;;  %484 = vst [vmem:[%s1154_s3 + $0x40] sm:$0xff] %v420_v10  ;;  %v422_v15 = vsel %vm294_vm10, %v230_v62, %v358_v8  ;;  %v163_v17 = vmul.f32 %v576_v3, %v731_v1 }
  0x16   :  { %485 = vst [vmem:[%s1154_s3 + $0x48] sm:$0xff] %v421_v11  ;;  %v423_v16 = vsel %vm295_vm11, %v231_v63, %v359_v9  ;;  %v164_v18 = vmul.f32 %v577_v4, %v731_v1  ;;  %486 = vst [vmem:[%s1154_s3 + $0x50] sm:$0xff] %v422_v15  ;;  %vm296_vm12 = vcmp.ge.f32.partialorder %v232_v12, 0.0  ;;  %v360_v20 = vmul.f32 0.2, %v232_v12  ;;  %v686_v63 = vld [vmem:[%s1151_s0 + $0x68] sm:$0xff]  }
  0x17   :  { %487 = vst [vmem:[%s1154_s3 + $0x58] sm:$0xff] %v423_v16  ;;  %vm297_vm13 = vcmp.ge.f32.partialorder %v233_v13, 0.0  ;;  %v361_v21 = vmul.f32 0.2, %v233_v13  ;;  %v234_v22 = vadd.f32 %v745_v7, %v163_v17  ;;  %v580_v24 = vunpack.c.l.bf16 %v681_v14 }
  0x18   :  { %v235_v23 = vadd.f32 %v745_v7, %v164_v18  ;;  %v581_v25 = vunpack.c.h.bf16 %v681_v14  ;;  %v424_v26 = vsel %vm296_vm12, %v232_v12, %v360_v20  ;;  %v584_v28 = vunpack.c.l.bf16 %v682_v19  ;;  %v687_v12 = vld [vmem:[%s1151_s0 + $0x70] sm:$0xff]  }
  0x19   :  { %v425_v27 = vsel %vm297_vm13, %v233_v13, %v361_v21  ;;  %v585_v29 = vunpack.c.h.bf16 %v682_v19  ;;  %488 = vst [vmem:[%s1154_s3 + $0x60] sm:$0xff] %v424_v26  ;;  %vm298_vm14 = vcmp.ge.f32.partialorder %v234_v22, 0.0  ;;  %v362_v31 = vmul.f32 0.2, %v234_v22  ;;  %v688_v19 = vld [vmem:[%s1151_s0 + $0x78] sm:$0xff]  }
  0x1a   :  { %489 = vst [vmem:[%s1154_s3 + $0x68] sm:$0xff] %v425_v27  ;;  %vm299_vm15 = vcmp.ge.f32.partialorder %v235_v23, 0.0  ;;  %v363_v32 = vmul.f32 0.2, %v235_v23  ;;  %v165_v33 = vmul.f32 %v580_v24, %v731_v1  ;;  %v166_v34 = vmul.f32 %v581_v25, %v731_v1 }
  0x1b   :  { %v167_v35 = vmul.f32 %v584_v28, %v731_v1  ;;  %v168_v36 = vmul.f32 %v585_v29, %v731_v1  ;;  %v426_v38 = vsel %vm298_vm14, %v234_v22, %v362_v31  ;;  %v588_v40 = vunpack.c.l.bf16 %v683_v30 }
  0x1c   :  { %v427_v39 = vsel %vm299_vm15, %v235_v23, %v363_v32  ;;  %v589_v41 = vunpack.c.h.bf16 %v683_v30  ;;  %490 = vst [vmem:[%s1154_s3 + $0x70] sm:$0xff] %v426_v38  ;;  %v236_v42 = vadd.f32 %v745_v7, %v165_v33  ;;  %v237_v43 = vadd.f32 %v745_v7, %v166_v34 }
  0x1d   :  { %491 = vst [vmem:[%s1154_s3 + $0x78] sm:$0xff] %v427_v39  ;;  %v238_v44 = vadd.f32 %v745_v7, %v167_v35  ;;  %v239_v45 = vadd.f32 %v745_v7, %v168_v36  ;;  %v169_v46 = vmul.f32 %v588_v40, %v731_v1  ;;  %v592_v48 = vunpack.c.l.bf16 %v684_v37  ;;  %v689_v40 = vld [vmem:[%s1151_s0 + $0x80] sm:$0xff]  }
  0x1e   :  { %v170_v47 = vmul.f32 %v589_v41, %v731_v1  ;;  %v593_v49 = vunpack.c.h.bf16 %v684_v37  ;;  %vm300_vm0 = vcmp.ge.f32.partialorder %v236_v42, 0.0  ;;  %v364_v50 = vmul.f32 0.2, %v236_v42 }
  0x1f   :  { %vm301_vm1 = vcmp.ge.f32.partialorder %v237_v43, 0.0  ;;  %v365_v51 = vmul.f32 0.2, %v237_v43  ;;  %vm302_vm2 = vcmp.ge.f32.partialorder %v238_v44, 0.0  ;;  %v366_v52 = vmul.f32 0.2, %v238_v44 }
  0x20   :  { %vm303_vm3 = vcmp.ge.f32.partialorder %v239_v45, 0.0  ;;  %v367_v53 = vmul.f32 0.2, %v239_v45  ;;  %v428_v54 = vsel %vm300_vm0, %v236_v42, %v364_v50  ;;  %v240_v56 = vadd.f32 %v745_v7, %v169_v46 }
  0x21   :  { %v429_v55 = vsel %vm301_vm1, %v237_v43, %v365_v51  ;;  %v241_v57 = vadd.f32 %v745_v7, %v170_v47  ;;  %492 = vst [vmem:[%s1154_s3 + $0x80] sm:$0xff] %v428_v54  ;;  %v430_v59 = vsel %vm302_vm2, %v238_v44, %v366_v52  ;;  %v171_v61 = vmul.f32 %v592_v48, %v731_v1 }
  0x22   :  { %493 = vst [vmem:[%s1154_s3 + $0x88] sm:$0xff] %v429_v55  ;;  %v431_v60 = vsel %vm303_vm3, %v239_v45, %v367_v53  ;;  %v172_v62 = vmul.f32 %v593_v49, %v731_v1  ;;  %494 = vst [vmem:[%s1154_s3 + $0x90] sm:$0xff] %v430_v59  ;;  %vm304_vm4 = vcmp.ge.f32.partialorder %v240_v56, 0.0  ;;  %v368_v0 = vmul.f32 0.2, %v240_v56  ;;  %v690_v45 = vld [vmem:[%s1151_s0 + $0x88] sm:$0xff]  }
  0x23   :  { %495 = vst [vmem:[%s1154_s3 + $0x98] sm:$0xff] %v431_v60  ;;  %vm305_vm5 = vcmp.ge.f32.partialorder %v241_v57, 0.0  ;;  %v369_v2 = vmul.f32 0.2, %v241_v57  ;;  %v242_v3 = vadd.f32 %v745_v7, %v171_v61  ;;  %v596_v5 = vunpack.c.l.bf16 %v685_v58 }
  0x24   :  { %v243_v4 = vadd.f32 %v745_v7, %v172_v62  ;;  %v597_v6 = vunpack.c.h.bf16 %v685_v58  ;;  %v432_v8 = vsel %vm304_vm4, %v240_v56, %v368_v0  ;;  %v600_v10 = vunpack.c.l.bf16 %v686_v63  ;;  %v691_v56 = vld [vmem:[%s1151_s0 + $0x90] sm:$0xff]  }
  0x25   :  { %v433_v9 = vsel %vm305_vm5, %v241_v57, %v369_v2  ;;  %v601_v11 = vunpack.c.h.bf16 %v686_v63  ;;  %496 = vst [vmem:[%s1154_s3 + $0xa0] sm:$0xff] %v432_v8  ;;  %vm306_vm6 = vcmp.ge.f32.partialorder %v242_v3, 0.0  ;;  %v370_v13 = vmul.f32 0.2, %v242_v3  ;;  %v692_v63 = vld [vmem:[%s1151_s0 + $0x98] sm:$0xff]  }
  0x26   :  { %497 = vst [vmem:[%s1154_s3 + $0xa8] sm:$0xff] %v433_v9  ;;  %vm307_vm7 = vcmp.ge.f32.partialorder %v243_v4, 0.0  ;;  %v371_v14 = vmul.f32 0.2, %v243_v4  ;;  %v173_v15 = vmul.f32 %v596_v5, %v731_v1  ;;  %v174_v16 = vmul.f32 %v597_v6, %v731_v1 }
  0x27   :  { %v175_v17 = vmul.f32 %v600_v10, %v731_v1  ;;  %v176_v18 = vmul.f32 %v601_v11, %v731_v1  ;;  %v434_v20 = vsel %vm306_vm6, %v242_v3, %v370_v13  ;;  %v604_v22 = vunpack.c.l.bf16 %v687_v12 }
  0x28   :  { %v435_v21 = vsel %vm307_vm7, %v243_v4, %v371_v14  ;;  %v605_v23 = vunpack.c.h.bf16 %v687_v12  ;;  %498 = vst [vmem:[%s1154_s3 + $0xb0] sm:$0xff] %v434_v20  ;;  %v244_v24 = vadd.f32 %v745_v7, %v173_v15  ;;  %v245_v25 = vadd.f32 %v745_v7, %v174_v16 }
  0x29   :  { %499 = vst [vmem:[%s1154_s3 + $0xb8] sm:$0xff] %v435_v21  ;;  %v246_v26 = vadd.f32 %v745_v7, %v175_v17  ;;  %v247_v27 = vadd.f32 %v745_v7, %v176_v18  ;;  %v177_v28 = vmul.f32 %v604_v22, %v731_v1  ;;  %v608_v30 = vunpack.c.l.bf16 %v688_v19  ;;  %v693_v22 = vld [vmem:[%s1151_s0 + $0xa0] sm:$0xff]  }
  0x2a   :  { %v178_v29 = vmul.f32 %v605_v23, %v731_v1  ;;  %v609_v31 = vunpack.c.h.bf16 %v688_v19  ;;  %vm308_vm8 = vcmp.ge.f32.partialorder %v244_v24, 0.0  ;;  %v372_v32 = vmul.f32 0.2, %v244_v24 }
  0x2b   :  { %vm309_vm9 = vcmp.ge.f32.partialorder %v245_v25, 0.0  ;;  %v373_v33 = vmul.f32 0.2, %v245_v25  ;;  %vm310_vm10 = vcmp.ge.f32.partialorder %v246_v26, 0.0  ;;  %v374_v34 = vmul.f32 0.2, %v246_v26 }
  0x2c   :  { %vm311_vm11 = vcmp.ge.f32.partialorder %v247_v27, 0.0  ;;  %v375_v35 = vmul.f32 0.2, %v247_v27  ;;  %v436_v36 = vsel %vm308_vm8, %v244_v24, %v372_v32  ;;  %v248_v38 = vadd.f32 %v745_v7, %v177_v28 }
  0x2d   :  { %v437_v37 = vsel %vm309_vm9, %v245_v25, %v373_v33  ;;  %v249_v39 = vadd.f32 %v745_v7, %v178_v29  ;;  %500 = vst [vmem:[%s1154_s3 + $0xc0] sm:$0xff] %v436_v36  ;;  %v438_v41 = vsel %vm310_vm10, %v246_v26, %v374_v34  ;;  %v179_v43 = vmul.f32 %v608_v30, %v731_v1 }
  0x2e   :  { %501 = vst [vmem:[%s1154_s3 + $0xc8] sm:$0xff] %v437_v37  ;;  %v439_v42 = vsel %vm311_vm11, %v247_v27, %v375_v35  ;;  %v180_v44 = vmul.f32 %v609_v31, %v731_v1  ;;  %502 = vst [vmem:[%s1154_s3 + $0xd0] sm:$0xff] %v438_v41  ;;  %vm312_vm12 = vcmp.ge.f32.partialorder %v248_v38, 0.0  ;;  %v376_v46 = vmul.f32 0.2, %v248_v38  ;;  %v694_v27 = vld [vmem:[%s1151_s0 + $0xa8] sm:$0xff]  }
  0x2f   :  { %503 = vst [vmem:[%s1154_s3 + $0xd8] sm:$0xff] %v439_v42  ;;  %vm313_vm13 = vcmp.ge.f32.partialorder %v249_v39, 0.0  ;;  %v377_v47 = vmul.f32 0.2, %v249_v39  ;;  %v250_v48 = vadd.f32 %v745_v7, %v179_v43  ;;  %v612_v50 = vunpack.c.l.bf16 %v689_v40 }
  0x30   :  { %v251_v49 = vadd.f32 %v745_v7, %v180_v44  ;;  %v613_v51 = vunpack.c.h.bf16 %v689_v40  ;;  %v440_v52 = vsel %vm312_vm12, %v248_v38, %v376_v46  ;;  %v616_v54 = vunpack.c.l.bf16 %v690_v45  ;;  %v695_v38 = vld [vmem:[%s1151_s0 + $0xb0] sm:$0xff]  }
  0x31   :  { %v441_v53 = vsel %vm313_vm13, %v249_v39, %v377_v47  ;;  %v617_v55 = vunpack.c.h.bf16 %v690_v45  ;;  %504 = vst [vmem:[%s1154_s3 + $0xe0] sm:$0xff] %v440_v52  ;;  %vm314_vm14 = vcmp.ge.f32.partialorder %v250_v48, 0.0  ;;  %v378_v57 = vmul.f32 0.2, %v250_v48  ;;  %v696_v45 = vld [vmem:[%s1151_s0 + $0xb8] sm:$0xff]  }
  0x32   :  { %505 = vst [vmem:[%s1154_s3 + $0xe8] sm:$0xff] %v441_v53  ;;  %vm315_vm15 = vcmp.ge.f32.partialorder %v251_v49, 0.0  ;;  %v379_v58 = vmul.f32 0.2, %v251_v49  ;;  %v181_v59 = vmul.f32 %v612_v50, %v731_v1  ;;  %v182_v60 = vmul.f32 %v613_v51, %v731_v1 }
  0x33   :  { %v183_v61 = vmul.f32 %v616_v54, %v731_v1  ;;  %v184_v62 = vmul.f32 %v617_v55, %v731_v1  ;;  %v442_v0 = vsel %vm314_vm14, %v250_v48, %v378_v57  ;;  %v620_v3 = vunpack.c.l.bf16 %v691_v56 }
  0x34   :  { %v443_v2 = vsel %vm315_vm15, %v251_v49, %v379_v58  ;;  %v621_v4 = vunpack.c.h.bf16 %v691_v56  ;;  %506 = vst [vmem:[%s1154_s3 + $0xf0] sm:$0xff] %v442_v0  ;;  %v252_v5 = vadd.f32 %v745_v7, %v181_v59  ;;  %v253_v6 = vadd.f32 %v745_v7, %v182_v60 }
  0x35   :  { %507 = vst [vmem:[%s1154_s3 + $0xf8] sm:$0xff] %v443_v2  ;;  %v254_v8 = vadd.f32 %v745_v7, %v183_v61  ;;  %v255_v9 = vadd.f32 %v745_v7, %v184_v62  ;;  %v185_v10 = vmul.f32 %v620_v3, %v731_v1  ;;  %v624_v12 = vunpack.c.l.bf16 %v692_v63  ;;  %v697_v3 = vld [vmem:[%s1151_s0 + $0xc0] sm:$0xff]  }
  0x36   :  { %v186_v11 = vmul.f32 %v621_v4, %v731_v1  ;;  %v625_v13 = vunpack.c.h.bf16 %v692_v63  ;;  %vm316_vm0 = vcmp.ge.f32.partialorder %v252_v5, 0.0  ;;  %v380_v14 = vmul.f32 0.2, %v252_v5 }
  0x37   :  { %vm317_vm1 = vcmp.ge.f32.partialorder %v253_v6, 0.0  ;;  %v381_v15 = vmul.f32 0.2, %v253_v6  ;;  %vm318_vm2 = vcmp.ge.f32.partialorder %v254_v8, 0.0  ;;  %v382_v16 = vmul.f32 0.2, %v254_v8 }
  0x38   :  { %vm319_vm3 = vcmp.ge.f32.partialorder %v255_v9, 0.0  ;;  %v383_v17 = vmul.f32 0.2, %v255_v9  ;;  %v444_v18 = vsel %vm316_vm0, %v252_v5, %v380_v14  ;;  %v256_v20 = vadd.f32 %v745_v7, %v185_v10 }
  0x39   :  { %v445_v19 = vsel %vm317_vm1, %v253_v6, %v381_v15  ;;  %v257_v21 = vadd.f32 %v745_v7, %v186_v11  ;;  %508 = vst [vmem:[%s1154_s3 + $0x100] sm:$0xff] %v444_v18  ;;  %v446_v23 = vsel %vm318_vm2, %v254_v8, %v382_v16  ;;  %v187_v25 = vmul.f32 %v624_v12, %v731_v1 }
  0x3a   :  { %509 = vst [vmem:[%s1154_s3 + $0x108] sm:$0xff] %v445_v19  ;;  %v447_v24 = vsel %vm319_vm3, %v255_v9, %v383_v17  ;;  %v188_v26 = vmul.f32 %v625_v13, %v731_v1  ;;  %510 = vst [vmem:[%s1154_s3 + $0x110] sm:$0xff] %v446_v23  ;;  %vm320_vm4 = vcmp.ge.f32.partialorder %v256_v20, 0.0  ;;  %v384_v28 = vmul.f32 0.2, %v256_v20  ;;  %v698_v9 = vld [vmem:[%s1151_s0 + $0xc8] sm:$0xff]  }
  0x3b   :  { %511 = vst [vmem:[%s1154_s3 + $0x118] sm:$0xff] %v447_v24  ;;  %vm321_vm5 = vcmp.ge.f32.partialorder %v257_v21, 0.0  ;;  %v385_v29 = vmul.f32 0.2, %v257_v21  ;;  %v258_v30 = vadd.f32 %v745_v7, %v187_v25  ;;  %v628_v32 = vunpack.c.l.bf16 %v693_v22 }
  0x3c   :  { %v259_v31 = vadd.f32 %v745_v7, %v188_v26  ;;  %v629_v33 = vunpack.c.h.bf16 %v693_v22  ;;  %v448_v34 = vsel %vm320_vm4, %v256_v20, %v384_v28  ;;  %v632_v36 = vunpack.c.l.bf16 %v694_v27  ;;  %v699_v20 = vld [vmem:[%s1151_s0 + $0xd0] sm:$0xff]  }
  0x3d   :  { %v449_v35 = vsel %vm321_vm5, %v257_v21, %v385_v29  ;;  %v633_v37 = vunpack.c.h.bf16 %v694_v27  ;;  %512 = vst [vmem:[%s1154_s3 + $0x120] sm:$0xff] %v448_v34  ;;  %vm322_vm6 = vcmp.ge.f32.partialorder %v258_v30, 0.0  ;;  %v386_v39 = vmul.f32 0.2, %v258_v30  ;;  %v700_v27 = vld [vmem:[%s1151_s0 + $0xd8] sm:$0xff]  }
  0x3e   :  { %513 = vst [vmem:[%s1154_s3 + $0x128] sm:$0xff] %v449_v35  ;;  %vm323_vm7 = vcmp.ge.f32.partialorder %v259_v31, 0.0  ;;  %v387_v40 = vmul.f32 0.2, %v259_v31  ;;  %v189_v41 = vmul.f32 %v628_v32, %v731_v1  ;;  %v190_v42 = vmul.f32 %v629_v33, %v731_v1 }
  0x3f   :  { %v191_v43 = vmul.f32 %v632_v36, %v731_v1  ;;  %v192_v44 = vmul.f32 %v633_v37, %v731_v1  ;;  %v450_v46 = vsel %vm322_vm6, %v258_v30, %v386_v39  ;;  %v636_v48 = vunpack.c.l.bf16 %v695_v38 }
  0x40   :  { %v451_v47 = vsel %vm323_vm7, %v259_v31, %v387_v40  ;;  %v637_v49 = vunpack.c.h.bf16 %v695_v38  ;;  %514 = vst [vmem:[%s1154_s3 + $0x130] sm:$0xff] %v450_v46  ;;  %v260_v50 = vadd.f32 %v745_v7, %v189_v41  ;;  %v261_v51 = vadd.f32 %v745_v7, %v190_v42 }
  0x41   :  { %515 = vst [vmem:[%s1154_s3 + $0x138] sm:$0xff] %v451_v47  ;;  %v262_v52 = vadd.f32 %v745_v7, %v191_v43  ;;  %v263_v53 = vadd.f32 %v745_v7, %v192_v44  ;;  %v193_v54 = vmul.f32 %v636_v48, %v731_v1  ;;  %v640_v56 = vunpack.c.l.bf16 %v696_v45  ;;  %v701_v48 = vld [vmem:[%s1151_s0 + $0xe0] sm:$0xff]  }
  0x42   :  { %v194_v55 = vmul.f32 %v637_v49, %v731_v1  ;;  %v641_v57 = vunpack.c.h.bf16 %v696_v45  ;;  %vm324_vm8 = vcmp.ge.f32.partialorder %v260_v50, 0.0  ;;  %v388_v58 = vmul.f32 0.2, %v260_v50 }
  0x43   :  { %vm325_vm9 = vcmp.ge.f32.partialorder %v261_v51, 0.0  ;;  %v389_v59 = vmul.f32 0.2, %v261_v51  ;;  %vm326_vm10 = vcmp.ge.f32.partialorder %v262_v52, 0.0  ;;  %v390_v60 = vmul.f32 0.2, %v262_v52 }
  0x44   :  { %vm327_vm11 = vcmp.ge.f32.partialorder %v263_v53, 0.0  ;;  %v391_v61 = vmul.f32 0.2, %v263_v53  ;;  %v452_v62 = vsel %vm324_vm8, %v260_v50, %v388_v58  ;;  %v264_v0 = vadd.f32 %v745_v7, %v193_v54 }
  0x45   :  { %v453_v63 = vsel %vm325_vm9, %v261_v51, %v389_v59  ;;  %v265_v2 = vadd.f32 %v745_v7, %v194_v55  ;;  %516 = vst [vmem:[%s1154_s3 + $0x140] sm:$0xff] %v452_v62  ;;  %v454_v4 = vsel %vm326_vm10, %v262_v52, %v390_v60  ;;  %v195_v6 = vmul.f32 %v640_v56, %v731_v1 }
  0x46   :  { %517 = vst [vmem:[%s1154_s3 + $0x148] sm:$0xff] %v453_v63  ;;  %v455_v5 = vsel %vm327_vm11, %v263_v53, %v391_v61  ;;  %v196_v8 = vmul.f32 %v641_v57, %v731_v1  ;;  %518 = vst [vmem:[%s1154_s3 + $0x150] sm:$0xff] %v454_v4  ;;  %vm328_vm12 = vcmp.ge.f32.partialorder %v264_v0, 0.0  ;;  %v392_v10 = vmul.f32 0.2, %v264_v0  ;;  %v702_v53 = vld [vmem:[%s1151_s0 + $0xe8] sm:$0xff]  }
  0x47   :  { %519 = vst [vmem:[%s1154_s3 + $0x158] sm:$0xff] %v455_v5  ;;  %vm329_vm13 = vcmp.ge.f32.partialorder %v265_v2, 0.0  ;;  %v393_v11 = vmul.f32 0.2, %v265_v2  ;;  %v266_v12 = vadd.f32 %v745_v7, %v195_v6  ;;  %v644_v14 = vunpack.c.l.bf16 %v697_v3 }
  0x48   :  { %v267_v13 = vadd.f32 %v745_v7, %v196_v8  ;;  %v645_v15 = vunpack.c.h.bf16 %v697_v3  ;;  %v456_v16 = vsel %vm328_vm12, %v264_v0, %v392_v10  ;;  %v648_v18 = vunpack.c.l.bf16 %v698_v9  ;;  %v703_v0 = vld [vmem:[%s1151_s0 + $0xf0] sm:$0xff]  }
  0x49   :  { %v457_v17 = vsel %vm329_vm13, %v265_v2, %v393_v11  ;;  %v649_v19 = vunpack.c.h.bf16 %v698_v9  ;;  %520 = vst [vmem:[%s1154_s3 + $0x160] sm:$0xff] %v456_v16  ;;  %vm330_vm14 = vcmp.ge.f32.partialorder %v266_v12, 0.0  ;;  %v394_v21 = vmul.f32 0.2, %v266_v12  ;;  %v704_v9 = vld [vmem:[%s1151_s0 + $0xf8] sm:$0xff]  }
  0x4a   :  { %521 = vst [vmem:[%s1154_s3 + $0x168] sm:$0xff] %v457_v17  ;;  %vm331_vm15 = vcmp.ge.f32.partialorder %v267_v13, 0.0  ;;  %v395_v22 = vmul.f32 0.2, %v267_v13  ;;  %v197_v23 = vmul.f32 %v644_v14, %v731_v1  ;;  %v198_v24 = vmul.f32 %v645_v15, %v731_v1 }
  0x4b   :  { %v199_v25 = vmul.f32 %v648_v18, %v731_v1  ;;  %v200_v26 = vmul.f32 %v649_v19, %v731_v1  ;;  %v458_v28 = vsel %vm330_vm14, %v266_v12, %v394_v21  ;;  %v652_v30 = vunpack.c.l.bf16 %v699_v20 }
  0x4c   :  { %v459_v29 = vsel %vm331_vm15, %v267_v13, %v395_v22  ;;  %v653_v31 = vunpack.c.h.bf16 %v699_v20  ;;  %522 = vst [vmem:[%s1154_s3 + $0x170] sm:$0xff] %v458_v28  ;;  %v268_v32 = vadd.f32 %v745_v7, %v197_v23  ;;  %v269_v33 = vadd.f32 %v745_v7, %v198_v24 }
  0x4d   :  { %523 = vst [vmem:[%s1154_s3 + $0x178] sm:$0xff] %v459_v29  ;;  %v270_v34 = vadd.f32 %v745_v7, %v199_v25  ;;  %v271_v35 = vadd.f32 %v745_v7, %v200_v26  ;;  %v201_v36 = vmul.f32 %v652_v30, %v731_v1  ;;  %v656_v38 = vunpack.c.l.bf16 %v700_v27 }
  0x4e   :  { %v202_v37 = vmul.f32 %v653_v31, %v731_v1  ;;  %v657_v39 = vunpack.c.h.bf16 %v700_v27  ;;  %vm332_vm0 = vcmp.ge.f32.partialorder %v268_v32, 0.0  ;;  %v396_v40 = vmul.f32 0.2, %v268_v32 }
  0x4f   :  { %vm333_vm1 = vcmp.ge.f32.partialorder %v269_v33, 0.0  ;;  %v397_v41 = vmul.f32 0.2, %v269_v33  ;;  %vm334_vm2 = vcmp.ge.f32.partialorder %v270_v34, 0.0  ;;  %v398_v42 = vmul.f32 0.2, %v270_v34 }
  0x50   :  { %vm335_vm3 = vcmp.ge.f32.partialorder %v271_v35, 0.0  ;;  %v399_v43 = vmul.f32 0.2, %v271_v35  ;;  %v460_v44 = vsel %vm332_vm0, %v268_v32, %v396_v40  ;;  %v272_v46 = vadd.f32 %v745_v7, %v201_v36 }
  0x51   :  { %v461_v45 = vsel %vm333_vm1, %v269_v33, %v397_v41  ;;  %v273_v47 = vadd.f32 %v745_v7, %v202_v37  ;;  %524 = vst [vmem:[%s1154_s3 + $0x180] sm:$0xff] %v460_v44  ;;  %v462_v49 = vsel %vm334_vm2, %v270_v34, %v398_v42  ;;  %v203_v51 = vmul.f32 %v656_v38, %v731_v1 }
  0x52   :  { %525 = vst [vmem:[%s1154_s3 + $0x188] sm:$0xff] %v461_v45  ;;  %v463_v50 = vsel %vm335_vm3, %v271_v35, %v399_v43  ;;  %v204_v52 = vmul.f32 %v657_v39, %v731_v1  ;;  %526 = vst [vmem:[%s1154_s3 + $0x190] sm:$0xff] %v462_v49  ;;  %vm336_vm4 = vcmp.ge.f32.partialorder %v272_v46, 0.0  ;;  %v400_v54 = vmul.f32 0.2, %v272_v46 }
  0x53   :  { %527 = vst [vmem:[%s1154_s3 + $0x198] sm:$0xff] %v463_v50  ;;  %vm337_vm5 = vcmp.ge.f32.partialorder %v273_v47, 0.0  ;;  %v401_v55 = vmul.f32 0.2, %v273_v47  ;;  %v274_v56 = vadd.f32 %v745_v7, %v203_v51  ;;  %v660_v58 = vunpack.c.l.bf16 %v701_v48 }
  0x54   :  { %v275_v57 = vadd.f32 %v745_v7, %v204_v52  ;;  %v661_v59 = vunpack.c.h.bf16 %v701_v48  ;;  %v464_v60 = vsel %vm336_vm4, %v272_v46, %v400_v54  ;;  %v664_v62 = vunpack.c.l.bf16 %v702_v53 }
  0x55   :  { %v465_v61 = vsel %vm337_vm5, %v273_v47, %v401_v55  ;;  %v665_v63 = vunpack.c.h.bf16 %v702_v53  ;;  %528 = vst [vmem:[%s1154_s3 + $0x1a0] sm:$0xff] %v464_v60  ;;  %vm338_vm6 = vcmp.ge.f32.partialorder %v274_v56, 0.0  ;;  %v402_v2 = vmul.f32 0.2, %v274_v56 }
  0x56   :  { %529 = vst [vmem:[%s1154_s3 + $0x1a8] sm:$0xff] %v465_v61  ;;  %vm339_vm7 = vcmp.ge.f32.partialorder %v275_v57, 0.0  ;;  %v403_v3 = vmul.f32 0.2, %v275_v57  ;;  %v205_v4 = vmul.f32 %v660_v58, %v731_v1  ;;  %v206_v5 = vmul.f32 %v661_v59, %v731_v1 }
  0x57   :  { %v207_v6 = vmul.f32 %v664_v62, %v731_v1  ;;  %v208_v8 = vmul.f32 %v665_v63, %v731_v1  ;;  %v466_v10 = vsel %vm338_vm6, %v274_v56, %v402_v2  ;;  %v668_v12 = vunpack.c.l.bf16 %v703_v0 }
  0x58   :  { %v467_v11 = vsel %vm339_vm7, %v275_v57, %v403_v3  ;;  %v669_v13 = vunpack.c.h.bf16 %v703_v0  ;;  %530 = vst [vmem:[%s1154_s3 + $0x1b0] sm:$0xff] %v466_v10  ;;  %v276_v14 = vadd.f32 %v745_v7, %v205_v4  ;;  %v277_v15 = vadd.f32 %v745_v7, %v206_v5 }
  0x59   :  { %531 = vst [vmem:[%s1154_s3 + $0x1b8] sm:$0xff] %v467_v11  ;;  %v278_v16 = vadd.f32 %v745_v7, %v207_v6  ;;  %v279_v17 = vadd.f32 %v745_v7, %v208_v8  ;;  %v209_v18 = vmul.f32 %v668_v12, %v731_v1  ;;  %v672_v20 = vunpack.c.l.bf16 %v704_v9 }
  0x5a   :  { %v210_v19 = vmul.f32 %v669_v13, %v731_v1  ;;  %v673_v21 = vunpack.c.h.bf16 %v704_v9  ;;  %vm340_vm8 = vcmp.ge.f32.partialorder %v276_v14, 0.0  ;;  %v404_v22 = vmul.f32 0.2, %v276_v14 }
  0x5b   :  { %vm341_vm9 = vcmp.ge.f32.partialorder %v277_v15, 0.0  ;;  %v405_v23 = vmul.f32 0.2, %v277_v15  ;;  %vm342_vm10 = vcmp.ge.f32.partialorder %v278_v16, 0.0  ;;  %v406_v24 = vmul.f32 0.2, %v278_v16 }
  0x5c   :  { %vm343_vm11 = vcmp.ge.f32.partialorder %v279_v17, 0.0  ;;  %v407_v25 = vmul.f32 0.2, %v279_v17  ;;  %v468_v26 = vsel %vm340_vm8, %v276_v14, %v404_v22  ;;  %v280_v28 = vadd.f32 %v745_v7, %v209_v18 }
  0x5d   :  { %v469_v27 = vsel %vm341_vm9, %v277_v15, %v405_v23  ;;  %v281_v29 = vadd.f32 %v745_v7, %v210_v19  ;;  %532 = vst [vmem:[%s1154_s3 + $0x1c0] sm:$0xff] %v468_v26  ;;  %v470_v30 = vsel %vm342_vm10, %v278_v16, %v406_v24  ;;  %v211_v32 = vmul.f32 %v672_v20, %v731_v1 }
  0x5e   :  { %533 = vst [vmem:[%s1154_s3 + $0x1c8] sm:$0xff] %v469_v27  ;;  %v471_v31 = vsel %vm343_vm11, %v279_v17, %v407_v25  ;;  %v212_v33 = vmul.f32 %v673_v21, %v731_v1  ;;  %534 = vst [vmem:[%s1154_s3 + $0x1d0] sm:$0xff] %v470_v30  ;;  %vm344_vm12 = vcmp.ge.f32.partialorder %v280_v28, 0.0  ;;  %v408_v34 = vmul.f32 0.2, %v280_v28 }
  0x5f   :  { %535 = vst [vmem:[%s1154_s3 + $0x1d8] sm:$0xff] %v471_v31  ;;  %vm345_vm13 = vcmp.ge.f32.partialorder %v281_v29, 0.0  ;;  %v409_v35 = vmul.f32 0.2, %v281_v29  ;;  %v282_v36 = vadd.f32 %v745_v7, %v211_v32 }
  0x60   :  { %v283_v37 = vadd.f32 %v745_v7, %v212_v33  ;;  %v472_v38 = vsel %vm344_vm12, %v280_v28, %v408_v34 }
  0x61   :  { %v473_v39 = vsel %vm345_vm13, %v281_v29, %v409_v35  ;;  %536 = vst [vmem:[%s1154_s3 + $0x1e0] sm:$0xff] %v472_v38  ;;  %vm346_vm14 = vcmp.ge.f32.partialorder %v282_v36, 0.0  ;;  %v410_v1 = vmul.f32 0.2, %v282_v36 }
  0x62   :  { %537 = vst [vmem:[%s1154_s3 + $0x1e8] sm:$0xff] %v473_v39  ;;  %vm347_vm15 = vcmp.ge.f32.partialorder %v283_v37, 0.0  ;;  %v411_v40 = vmul.f32 0.2, %v283_v37 }
  0x63   :  { %v474_v41 = vsel %vm346_vm14, %v282_v36, %v410_v1 }
  0x64   :  { %v475_v42 = vsel %vm347_vm15, %v283_v37, %v411_v40  ;;  %538 = vst [vmem:[%s1154_s3 + $0x1f0] sm:$0xff] %v474_v41 }
  0x65   :  { %539 = vst [vmem:[%s1154_s3 + $0x1f8] sm:$0xff] %v475_v42 }

// kernel: cnnblock_forward.2
= control target key start
LH: loop header
LB: loop body
LE: loop exit
PB: predicated region body
PF: predicated region fallthrough
CT: control target
= control target key end

     0   :  { %s1517_s18 = smov 0   ;;  %s1519_s19 = smov 0   ;;  %s1871_s0 = inlined_call_operand.vmem [shape: bf16[512,128], index: 0, kind: input, shape index: {}]   ;;  %s1872_s1 = inlined_call_operand.vmem [shape: bf16[128,128], index: 1, kind: input, shape index: {}]   ;;  %s1873_s2 = inlined_call_operand.vmem [shape: bf16[512,128], index: 2, kind: output, shape index: {0}]   ;;  %s1874_s3 = inlined_call_operand.vmem [shape: f32[2,1,128], index: 3, kind: output, shape index: {1}]   ;;  %s1875_s4 = inlined_call_operand.vmem [shape: f32[2,1,128], index: 4, kind: output, shape index: {2}]   ;;  %s1876_s5 = inlined_call_operand.vmem [shape: f32[2,1,128], index: 5, kind: output, shape index: {3}]  }
   0x1   :  { %s1521_s20 = smov 0  }
   0x2 LB: > { %s28_s21 = sadd.s32 1, %s1480_s19  ;;  %p1134_p0 = scmp.ge.s32.totalorder %s1484_s20, 1  ;;  %s1484_s20 = sphi %s1521_s20, %s16_s20   ;;  %s1480_s19 = sphi %s1519_s19, %s1878_s19   ;;  %s1476_s18 = sphi %s1517_s18, %s1877_s18  }
   0x3   : > { %p30_p1 = scmp.ge.s32.totalorder %s28_s21, 2  ;;  %p213_p2 = scmp.lt.s32.totalorder %s1484_s20, 3 }
   0x5   : > { %s1880_s21 = smov (%p30_p1, %s28_s21), 0  ;;  %p214_p3 = pnand %p1134_p0, %p213_p2 }
   0x6   : > { %v1438_v0 = vld [vmem:[%s1872_s1] sm:$0xff] (!%p214_p3)   ;;  %s1135_s24 = sshll.u32 (!%p214_p3), %s1476_s18, 5  ;;  %v1439_v1 = vld [vmem:[%s1872_s1 + $0x8] sm:$0xff] (!%p214_p3)   ;;  %v1440_v2 = vld [vmem:[%s1872_s1 + $0x10] sm:$0xff] (!%p214_p3)   ;;  %p268_p5 = scmp.lt.s32.totalorder (!%p214_p3), %s1476_s18, 1  ;;  %v1486_v24 = vmov (!%p214_p3), 0.0  }
   0x7   : > { %217 = sbr.rel (%p214_p3) target bundleno = 425 (0x1a9), region = 28  ;;  %p254_p4 = scmp.lt.s32.totalorder (!%p214_p3), %s1135_s24, 63  ;;  %1349 = vmatprep.subr.bf16.mxu0 (!%p214_p3), %v1438_v0  ;;  %1397 = vmatprep.subr.bf16.mxu1 (!%p214_p3), %v1438_v0  ;;  %v1441_v3 = vld [vmem:[%s1872_s1 + $0x18] sm:$0xff] (!%p214_p3)   ;;  %v1442_v5 = vld [vmem:[%s1872_s1 + $0x20] sm:$0xff] (!%p214_p3)   ;;  %v1443_v6 = vld [vmem:[%s1872_s1 + $0x28] sm:$0xff] (!%p214_p3)  }
   0x8   : > { %1350 = vmatpush3.bf16.msra.mxu0 (!%p214_p3), %v1438_v0  ;;  %1405 = vmatpush3.bf16.msra.mxu1 (!%p214_p3), %v1438_v0  ;;  %v1444_v8 = vld [vmem:[%s1872_s1 + $0x30] sm:$0xff] (!%p214_p3)   ;;  %v1445_v9 = vld [vmem:[%s1872_s1 + $0x38] sm:$0xff] (!%p214_p3)  }
   0x9   : > { %1351 = vmatprep.subr.bf16.mxu0 (!%p214_p3), %v1439_v1  ;;  %1398 = vmatprep.subr.bf16.mxu1 (!%p214_p3), %v1439_v1 }
   0xc   : > { %1352 = vmatpush3.bf16.msra.mxu0 (!%p214_p3), %v1439_v1  ;;  %1406 = vmatpush3.bf16.msra.mxu1 (!%p214_p3), %v1439_v1 }
   0xd   : > { %1353 = vmatprep.subr.bf16.mxu0 (!%p214_p3), %v1440_v2  ;;  %1399 = vmatprep.subr.bf16.mxu1 (!%p214_p3), %v1440_v2 }
   0xe   : > { %s1882_s24 = smov (!%p254_p4, %s1135_s24), 63  ;;  %s1884_s18 = smov (!%p268_p5, %s1476_s18), 1 }
   0xf   : > { %s1136_s29 = sshll.u32 %s1882_s24, 2  ;;  %s1596_s25 = scalar_lea.vmem %s1875_s4, %s1884_s18 }
  0x10   : > { %s1555_s7 = scalar_lea.vmem %s1871_s0, %s1136_s29  ;;  %1354 = vmatpush3.bf16.msra.mxu0 %v1440_v2  ;;  %1407 = vmatpush3.bf16.msra.mxu1 %v1440_v2  ;;  %s1602_s28 = scalar_lea.vmem %s1876_s5, %s1884_s18  ;;  %834 = vst [vmem:[%s1596_s25] sm:$0x1] %v1486_v24 }
  0x11   : > { %v1446_v4 = vld [vmem:[%s1555_s7] sm:$0xff]   ;;  %1355 = vmatprep.subr.bf16.mxu0 %v1441_v3  ;;  %1400 = vmatprep.subr.bf16.mxu1 %v1441_v3  ;;  %v1447_v10 = vld [vmem:[%s1555_s7 + $0x8] sm:$0xff]   ;;  %v1448_v12 = vld [vmem:[%s1555_s7 + $0x10] sm:$0xff]   ;;  %835 = vst [vmem:[%s1602_s28] sm:$0x1] %v1486_v24  ;;  %s270_s8 = scalar_lea.vmem %s1874_s3, %s1884_s18 }
  0x12   : > { %1365 = vmatprep.mubr.bf16.mxu0 %v1446_v4  ;;  %v1454_v7 = vld [vmem:[%s1555_s7 + $0x40] sm:$0xff]   ;;  %v1455_v11 = vld [vmem:[%s1555_s7 + $0x48] sm:$0xff]   ;;  %v1456_v13 = vld [vmem:[%s1555_s7 + $0x50] sm:$0xff]  }
  0x13   : > { %1381 = vmatprep.mubr.bf16.mxu1 %v1454_v7  ;;  %v1449_v14 = vld [vmem:[%s1555_s7 + $0x18] sm:$0xff]   ;;  %v1450_v16 = vld [vmem:[%s1555_s7 + $0x20] sm:$0xff]   ;;  %v1451_v18 = vld [vmem:[%s1555_s7 + $0x28] sm:$0xff]  }
  0x14   : > { %1356 = vmatpush3.bf16.msra.mxu0 %v1441_v3  ;;  %1408 = vmatpush3.bf16.msra.mxu1 %v1441_v3  ;;  %v1457_v15 = vld [vmem:[%s1555_s7 + $0x58] sm:$0xff]   ;;  %v1458_v17 = vld [vmem:[%s1555_s7 + $0x60] sm:$0xff]   ;;  %v1459_v19 = vld [vmem:[%s1555_s7 + $0x68] sm:$0xff]  }
  0x15   : > { %1357 = vmatprep.subr.bf16.mxu0 %v1442_v5  ;;  %1401 = vmatprep.subr.bf16.mxu1 %v1442_v5  ;;  %v1452_v20 = vld [vmem:[%s1555_s7 + $0x30] sm:$0xff]   ;;  %v1453_v22 = vld [vmem:[%s1555_s7 + $0x38] sm:$0xff]  }
  0x16   : > { %v1460_v21 = vld [vmem:[%s1555_s7 + $0x70] sm:$0xff]   ;;  %v1461_v23 = vld [vmem:[%s1555_s7 + $0x78] sm:$0xff]   ;;  %s1619_s7 = scalar_lea.vmem %s1873_s2, %s1136_s29 }
  0x18   : > { %1358 = vmatpush3.bf16.msra.mxu0 %v1442_v5  ;;  %1409 = vmatpush3.bf16.msra.mxu1 %v1442_v5 }
  0x19   : > { %1359 = vmatprep.subr.bf16.mxu0 %v1443_v6  ;;  %1402 = vmatprep.subr.bf16.mxu1 %v1443_v6 }
  0x1c   : > { %1360 = vmatpush3.bf16.msra.mxu0 %v1443_v6  ;;  %1410 = vmatpush3.bf16.msra.mxu1 %v1443_v6 }
  0x1d   : > { %1361 = vmatprep.subr.bf16.mxu0 %v1444_v8  ;;  %1403 = vmatprep.subr.bf16.mxu1 %v1444_v8 }
  0x20   : > { %1362 = vmatpush3.bf16.msra.mxu0 %v1444_v8  ;;  %1411 = vmatpush3.bf16.msra.mxu1 %v1444_v8 }
  0x21   : > { %1363 = vmatprep.subr.bf16.mxu0 %v1445_v9  ;;  %1404 = vmatprep.subr.bf16.mxu1 %v1445_v9 }
  0x24   : > { %1364 = vmatpush3.bf16.msra.mxu0 %v1445_v9  ;;  %1412 = vmatpush3.bf16.msra.mxu1 %v1445_v9 }
  0x27   : > { %1366 = vmatmul.mubr.bf16.vlgmr.msra.gmra.mrb[0].mxu0 %v1447_v10  ;;  %1382 = vmatmul.mubr.bf16.vlgmr.msra.gmra.mrb[0].mxu1 %v1455_v11 }
  0x28   : > { %1369 = vmatprep.mubr.bf16.mxu0 %v1448_v12  ;;  %1385 = vmatprep.mubr.bf16.mxu1 %v1456_v13 }
  0x2f   : > { %1370 = vmatmul.mubr.bf16.gmra.mrb[4].mxu0 %v1449_v14  ;;  %1386 = vmatmul.mubr.bf16.gmra.mrb[4].mxu1 %v1457_v15 }
  0x30   : > { %1373 = vmatprep.mubr.bf16.mxu0 %v1450_v16  ;;  %1389 = vmatprep.mubr.bf16.mxu1 %v1458_v17 }
  0x37   : > { %1374 = vmatmul.mubr.bf16.gmra.mrb[8].mxu0 %v1451_v18  ;;  %1390 = vmatmul.mubr.bf16.gmra.mrb[8].mxu1 %v1459_v19 }
  0x38   : > { %1377 = vmatprep.mubr.bf16.mxu0 %v1452_v20  ;;  %1393 = vmatprep.mubr.bf16.mxu1 %v1460_v21 }
  0x3f   : > { %1378 = vmatmul.mubr.bf16.gmra.mrb[12].mxu0 %v1453_v22  ;;  %1394 = vmatmul.mubr.bf16.gmra.mrb[12].mxu1 %v1461_v23 }
  0xfa   : > { %v1606_v25 = vpop.f32.mrb[0].mxu0  ;;  %v1608_v26 = vpop.f32.mrb[0].mxu1 }
  0xfb   : > { %v1610_v27 = vpop.f32.mrb[1].mxu0  ;;  %v1612_v28 = vpop.f32.mrb[1].mxu1 }
  0xfc   : > { %v1621_v29 = vpop.f32.mrb[2].mxu0  ;;  %v1623_v30 = vpop.f32.mrb[2].mxu1 }
  0xfd   : > { %v1238_v31 = vpack.c.bf16 %v1621_v29, %v1606_v25  ;;  %v1627_v32 = vpop.f32.mrb[3].mxu0  ;;  %v1278_v33 = vpack.c.bf16 %v1623_v30, %v1608_v26  ;;  %v1631_v34 = vpop.f32.mrb[3].mxu1 }
  0xfe   : > { %v1233_v35 = vpack.c.bf16 %v1627_v32, %v1610_v27  ;;  %v795_v36 = vadd.f32 %v1627_v32, %v1610_v27  ;;  %v1273_v37 = vpack.c.bf16 %v1631_v34, %v1612_v28 }
  0xff   : > { %1310 = vst [vmem:[%s1619_s7 + $0x8] sm:$0xff] %v1238_v31   ;;  %1318 = vst [vmem:[%s1619_s7 + $0x48] sm:$0xff] %v1278_v33  }
 0x100   : > { %1234 = vst [vmem:[%s1619_s7] sm:$0xff] %v1233_v35   ;;  %v796_v38 = vadd.f32 %v1606_v25, %v795_v36  ;;  %1317 = vst [vmem:[%s1619_s7 + $0x40] sm:$0xff] %v1273_v37  }
 0x102   : > { %v1644_v39 = vpop.f32.mrb[4].mxu0  ;;  %v797_v40 = vadd.f32 %v1621_v29, %v796_v38  ;;  %v1647_v41 = vpop.f32.mrb[4].mxu1 }
 0x103   : > { %v1649_v42 = vpop.f32.mrb[5].mxu0  ;;  %v1651_v43 = vpop.f32.mrb[5].mxu1 }
 0x104   : > { %v798_v44 = vadd.f32 %v797_v40, %v1649_v42  ;;  %v1654_v45 = vpop.f32.mrb[6].mxu0  ;;  %v1656_v46 = vpop.f32.mrb[6].mxu1 }
 0x105   : > { %v1248_v47 = vpack.c.bf16 %v1654_v45, %v1644_v39  ;;  %v1660_v48 = vpop.f32.mrb[7].mxu0  ;;  %v1288_v49 = vpack.c.bf16 %v1656_v46, %v1647_v41  ;;  %v1664_v50 = vpop.f32.mrb[7].mxu1 }
 0x106   : > { %v1243_v51 = vpack.c.bf16 %v1660_v48, %v1649_v42  ;;  %v799_v52 = vadd.f32 %v798_v44, %v1660_v48  ;;  %v1283_v53 = vpack.c.bf16 %v1664_v50, %v1651_v43 }
 0x107   : > { %1312 = vst [vmem:[%s1619_s7 + $0x18] sm:$0xff] %v1248_v47   ;;  %1320 = vst [vmem:[%s1619_s7 + $0x58] sm:$0xff] %v1288_v49  }
 0x108   : > { %1311 = vst [vmem:[%s1619_s7 + $0x10] sm:$0xff] %v1243_v51   ;;  %v800_v54 = vadd.f32 %v1644_v39, %v799_v52  ;;  %1319 = vst [vmem:[%s1619_s7 + $0x50] sm:$0xff] %v1283_v53  }
 0x10a   : > { %v1676_v55 = vpop.f32.mrb[8].mxu0  ;;  %v801_v56 = vadd.f32 %v1654_v45, %v800_v54  ;;  %v1679_v57 = vpop.f32.mrb[8].mxu1 }
 0x10b   : > { %v1681_v58 = vpop.f32.mrb[9].mxu0  ;;  %v1683_v59 = vpop.f32.mrb[9].mxu1 }
 0x10c   : > { %v802_v60 = vadd.f32 %v801_v56, %v1681_v58  ;;  %v1686_v61 = vpop.f32.mrb[10].mxu0  ;;  %v1688_v62 = vpop.f32.mrb[10].mxu1 }
 0x10d   : > { %v1258_v63 = vpack.c.bf16 %v1686_v61, %v1676_v55  ;;  %v1692_v0 = vpop.f32.mrb[11].mxu0  ;;  %v1298_v1 = vpack.c.bf16 %v1688_v62, %v1679_v57  ;;  %v1696_v2 = vpop.f32.mrb[11].mxu1 }
 0x10e   : > { %v1253_v3 = vpack.c.bf16 %v1692_v0, %v1681_v58  ;;  %v803_v4 = vadd.f32 %v802_v60, %v1692_v0  ;;  %v1293_v5 = vpack.c.bf16 %v1696_v2, %v1683_v59 }
 0x10f   : > { %1314 = vst [vmem:[%s1619_s7 + $0x28] sm:$0xff] %v1258_v63   ;;  %1322 = vst [vmem:[%s1619_s7 + $0x68] sm:$0xff] %v1298_v1  }
 0x110   : > { %1313 = vst [vmem:[%s1619_s7 + $0x20] sm:$0xff] %v1253_v3   ;;  %v804_v6 = vadd.f32 %v1676_v55, %v803_v4  ;;  %1321 = vst [vmem:[%s1619_s7 + $0x60] sm:$0xff] %v1293_v5  }
 0x112   : > { %v1379_v7 = vpop.f32.mrb[12].mxu0  ;;  %v805_v8 = vadd.f32 %v1686_v61, %v804_v6  ;;  %v1709_v9 = vpop.f32.mrb[12].mxu1 }
 0x113   : > { %v552_v10 = vpop.f32.mrb[13].mxu0  ;;  %v1711_v11 = vpop.f32.mrb[13].mxu1 }
 0x114   : > { %v806_v12 = vadd.f32 %v805_v8, %v552_v10  ;;  %v1380_v13 = vpop.f32.mrb[14].mxu0  ;;  %v1713_v14 = vpop.f32.mrb[14].mxu1 }
 0x115   : > { %v1268_v15 = vpack.c.bf16 %v1380_v13, %v1379_v7  ;;  %v555_v16 = vpop.f32.mrb[15].mxu0  ;;  %v1308_v17 = vpack.c.bf16 %v1713_v14, %v1709_v9  ;;  %v1717_v18 = vpop.f32.mrb[15].mxu1 }
 0x116   : > { %v1263_v19 = vpack.c.bf16 %v555_v16, %v552_v10  ;;  %v807_v20 = vadd.f32 %v806_v12, %v555_v16  ;;  %v1303_v21 = vpack.c.bf16 %v1717_v18, %v1711_v11 }
 0x117   : > { %1316 = vst [vmem:[%s1619_s7 + $0x38] sm:$0xff] %v1268_v15   ;;  %1324 = vst [vmem:[%s1619_s7 + $0x78] sm:$0xff] %v1308_v17  }
 0x118   : > { %1315 = vst [vmem:[%s1619_s7 + $0x30] sm:$0xff] %v1263_v19   ;;  %v808_v22 = vadd.f32 %v1379_v7, %v807_v20  ;;  %1323 = vst [vmem:[%s1619_s7 + $0x70] sm:$0xff] %v1303_v21  }
 0x11a   : > { %v809_v23 = vadd.f32 %v1380_v13, %v808_v22 }
 0x11c   : > { %v810_v24 = vadd.f32 %v809_v23, %v1612_v28 }
 0x11e   : > { %v811_v31 = vadd.f32 %v810_v24, %v1631_v34 }
 0x120   : > { %v812_v33 = vadd.f32 %v1608_v26, %v811_v31 }
 0x122   : > { %v813_v35 = vadd.f32 %v1623_v30, %v812_v33 }
 0x124   : > { %v814_v36 = vadd.f32 %v813_v35, %v1651_v43 }
 0x126   : > { %v815_v37 = vadd.f32 %v814_v36, %v1664_v50 }
 0x128   : > { %v816_v38 = vadd.f32 %v1647_v41, %v815_v37 }
 0x12a   : > { %v817_v40 = vadd.f32 %v1656_v46, %v816_v38 }
 0x12c   : > { %v818_v44 = vadd.f32 %v817_v40, %v1683_v59 }
 0x12e   : > { %v819_v47 = vadd.f32 %v818_v44, %v1696_v2 }
 0x130   : > { %v820_v49 = vadd.f32 %v1679_v57, %v819_v47 }
 0x132   : > { %v821_v51 = vadd.f32 %v1688_v62, %v820_v49 }
 0x134   : > { %v822_v52 = vadd.f32 %v821_v51, %v1711_v11 }
 0x136   : > { %v823_v53 = vadd.f32 %v822_v52, %v1717_v18 }
 0x138   : > { %v824_v54 = vadd.f32 %v1709_v9, %v823_v53 }
 0x13a   : > { %v825_v56 = vadd.f32 %v1713_v14, %v824_v54 }
 0x13c   : > { %v826_v60 = vrot.slane %v825_v56, 4 }
 0x13e   : > { %v827_v63 = vadd.f32 %v826_v60, %v825_v56 }
 0x140   : > { %v828_v1 = vrot.slane %v827_v63, 2 }
 0x142   : > { %v829_v3 = vadd.f32 %v828_v1, %v827_v63 }
 0x144   : > { %v830_v4 = vrot.slane %v829_v3, 1 }
 0x146   : > { %v831_v5 = vadd.f32 %v830_v4, %v829_v3 }
 0x148   : > { %v832_v6 = vmul.f32 0.00390625, %v831_v5 }
 0x14a   : > { %833 = vst [vmem:[%s270_s8] sm:$0x1] %v832_v6 }
 0x151   : > { %v1195_v8 = vld [vmem:[%s270_s8] ss:$0 sm:$0xff] }
 0x152   : > { %v843_v12 = vsub.f32 %v1610_v27, %v1195_v8  ;;  %v844_v15 = vsub.f32 %v1627_v32, %v1195_v8  ;;  %v845_v17 = vsub.f32 %v1606_v25, %v1195_v8  ;;  %v846_v19 = vsub.f32 %v1621_v29, %v1195_v8 }
 0x153   : > { %v847_v20 = vsub.f32 %v1649_v42, %v1195_v8  ;;  %v848_v21 = vsub.f32 %v1660_v48, %v1195_v8  ;;  %v849_v22 = vsub.f32 %v1644_v39, %v1195_v8  ;;  %v850_v23 = vsub.f32 %v1654_v45, %v1195_v8 }
 0x154   : > { %v851_v24 = vsub.f32 %v1681_v58, %v1195_v8  ;;  %v852_v31 = vsub.f32 %v1692_v0, %v1195_v8  ;;  %v853_v27 = vsub.f32 %v1676_v55, %v1195_v8  ;;  %v854_v32 = vsub.f32 %v1686_v61, %v1195_v8 }
 0x155   : > { %v855_v33 = vsub.f32 %v552_v10, %v1195_v8  ;;  %v856_v25 = vsub.f32 %v555_v16, %v1195_v8  ;;  %v857_v35 = vsub.f32 %v1379_v7, %v1195_v8  ;;  %v1757_v29 = vsub.f32 %v1380_v13, %v1195_v8 }
 0x156   : > { %v1760_v42 = vsub.f32 %v1612_v28, %v1195_v8  ;;  %v1763_v39 = vsub.f32 %v1631_v34, %v1195_v8  ;;  %v1766_v45 = vsub.f32 %v1608_v26, %v1195_v8  ;;  %v1769_v48 = vsub.f32 %v1623_v30, %v1195_v8 }
 0x157   : > { %v1772_v55 = vsub.f32 %v1651_v43, %v1195_v8  ;;  %v1775_v58 = vsub.f32 %v1664_v50, %v1195_v8  ;;  %v1778_v61 = vsub.f32 %v1647_v41, %v1195_v8  ;;  %v1781_v28 = vsub.f32 %v1656_v46, %v1195_v8 }
 0x158   : > { %v1784_v34 = vsub.f32 %v1683_v59, %v1195_v8  ;;  %v1787_v26 = vsub.f32 %v1696_v2, %v1195_v8  ;;  %v1790_v30 = vsub.f32 %v1679_v57, %v1195_v8  ;;  %v1793_v43 = vsub.f32 %v1688_v62, %v1195_v8 }
 0x159   : > { %v1796_v50 = vsub.f32 %v1711_v11, %v1195_v8  ;;  %v1799_v41 = vsub.f32 %v1717_v18, %v1195_v8  ;;  %v1802_v46 = vsub.f32 %v1709_v9, %v1195_v8  ;;  %v1805_v59 = vsub.f32 %v1713_v14, %v1195_v8 }
 0x15a   : > { %v876_v0 = vadd.f32 %v844_v15, %v843_v12  ;;  %v916_v57 = vmul.f32 %v843_v12, %v843_v12  ;;  %v917_v10 = vmul.f32 %v844_v15, %v844_v15  ;;  %v918_v16 = vmul.f32 %v845_v17, %v845_v17 }
 0x15b   : > { %v919_v37 = vmul.f32 %v846_v19, %v846_v19  ;;  %v920_v40 = vmul.f32 %v847_v20, %v847_v20  ;;  %v921_v47 = vmul.f32 %v848_v21, %v848_v21  ;;  %v922_v51 = vmul.f32 %v849_v22, %v849_v22 }
 0x15c   : > { %v877_v2 = vadd.f32 %v876_v0, %v845_v17  ;;  %v948_v36 = vadd.f32 %v917_v10, %v916_v57  ;;  %v923_v54 = vmul.f32 %v850_v23, %v850_v23  ;;  %v924_v63 = vmul.f32 %v851_v24, %v851_v24 }
 0x15d   : > { %v925_v4 = vmul.f32 %v852_v31, %v852_v31  ;;  %v926_v8 = vmul.f32 %v853_v27, %v853_v27  ;;  %v927_v17 = vmul.f32 %v854_v32, %v854_v32 }
 0x15e   : > { %v878_v7 = vadd.f32 %v877_v2, %v846_v19  ;;  %v949_v38 = vadd.f32 %v948_v36, %v918_v16  ;;  %v934_v36 = vmul.f32 %v1766_v45, %v1766_v45 }
 0x160   : > { %v879_v13 = vadd.f32 %v878_v7, %v847_v20  ;;  %v950_v44 = vadd.f32 %v949_v38, %v919_v37  ;;  %v930_v7 = vmul.f32 %v857_v35, %v857_v35  ;;  %v935_v37 = vmul.f32 %v1769_v48, %v1769_v48 }
 0x162   : > { %v880_v62 = vadd.f32 %v879_v13, %v848_v21  ;;  %v951_v49 = vadd.f32 %v950_v44, %v920_v40  ;;  %v928_v21 = vmul.f32 %v855_v33, %v855_v33  ;;  %v937_v44 = vmul.f32 %v1775_v58, %v1775_v58 }
 0x164   : > { %v881_v11 = vadd.f32 %v880_v62, %v849_v22  ;;  %v952_v52 = vadd.f32 %v951_v49, %v921_v47  ;;  %v938_v47 = vmul.f32 %v1778_v61, %v1778_v61 }
 0x166   : > { %v882_v18 = vadd.f32 %v881_v11, %v850_v23  ;;  %v953_v56 = vadd.f32 %v952_v52, %v922_v51  ;;  %v929_v23 = vmul.f32 %v856_v25, %v856_v25  ;;  %v940_v52 = vmul.f32 %v1784_v34, %v1784_v34 }
 0x168   : > { %v883_v9 = vadd.f32 %v882_v18, %v851_v24  ;;  %v954_v1 = vadd.f32 %v953_v56, %v923_v54  ;;  %v936_v18 = vmul.f32 %v1772_v55, %v1772_v55  ;;  %v941_v54 = vmul.f32 %v1787_v26, %v1787_v26 }
 0x16a   : > { %v884_v14 = vadd.f32 %v883_v9, %v852_v31  ;;  %v955_v5 = vadd.f32 %v954_v1, %v924_v63  ;;  %v943_v1 = vmul.f32 %v1793_v43, %v1793_v43 }
 0x16c   : > { %v885_v53 = vadd.f32 %v884_v14, %v853_v27  ;;  %v956_v12 = vadd.f32 %v955_v5, %v925_v4  ;;  %v931_v27 = vmul.f32 %v1757_v29, %v1757_v29  ;;  %v939_v14 = vmul.f32 %v1781_v28, %v1781_v28 }
 0x16d   : > { %v944_v4 = vmul.f32 %v1796_v50, %v1796_v50 }
 0x16e   : > { %v886_v60 = vadd.f32 %v885_v53, %v854_v32  ;;  %v957_v19 = vadd.f32 %v956_v12, %v926_v8  ;;  %v946_v12 = vmul.f32 %v1802_v46, %v1802_v46 }
 0x170   : > { %v887_v3 = vadd.f32 %v886_v60, %v855_v33  ;;  %v958_v22 = vadd.f32 %v957_v19, %v927_v17  ;;  %v932_v33 = vmul.f32 %v1760_v42, %v1760_v42  ;;  %v942_v60 = vmul.f32 %v1790_v30, %v1790_v30 }
 0x171   : > { %v947_v17 = vmul.f32 %v1805_v59, %v1805_v59 }
 0x172   : > { %v888_v6 = vadd.f32 %v887_v3, %v856_v25  ;;  %v959_v2 = vadd.f32 %v958_v22, %v928_v21  ;;  %v933_v25 = vmul.f32 %v1763_v39, %v1763_v39  ;;  %v875_v22 = vld [vmem:[%s1596_s25] sm:$0x1] }
 0x174   : > { %v889_v15 = vadd.f32 %v888_v6, %v857_v35  ;;  %v960_v57 = vadd.f32 %v959_v2, %v929_v23  ;;  %v945_v6 = vmul.f32 %v1799_v41, %v1799_v41 }
 0x176   : > { %v890_v20 = vadd.f32 %v889_v15, %v1757_v29  ;;  %v961_v10 = vadd.f32 %v960_v57, %v930_v7  ;;  %v915_v57 = vld [vmem:[%s1602_s28] sm:$0x1] }
 0x178   : > { %v891_v0 = vadd.f32 %v890_v20, %v1760_v42  ;;  %v962_v13 = vadd.f32 %v961_v10, %v931_v27 }
 0x17a   : > { %v892_v24 = vadd.f32 %v891_v0, %v1763_v39  ;;  %v963_v16 = vadd.f32 %v962_v13, %v932_v33 }
 0x17c   : > { %v893_v31 = vadd.f32 %v892_v24, %v1766_v45  ;;  %v964_v11 = vadd.f32 %v963_v16, %v933_v25 }
 0x17e   : > { %v894_v32 = vadd.f32 %v893_v31, %v1769_v48  ;;  %v965_v38 = vadd.f32 %v964_v11, %v934_v36 }
 0x180   : > { %v895_v62 = vadd.f32 %v894_v32, %v1772_v55  ;;  %v966_v40 = vadd.f32 %v965_v38, %v935_v37 }
 0x182   : > { %v896_v35 = vadd.f32 %v895_v62, %v1775_v58  ;;  %v967_v9 = vadd.f32 %v966_v40, %v936_v18 }
 0x184   : > { %v897_v29 = vadd.f32 %v896_v35, %v1778_v61  ;;  %v968_v49 = vadd.f32 %v967_v9, %v937_v44 }
 0x186   : > { %v898_v42 = vadd.f32 %v897_v29, %v1781_v28  ;;  %v969_v51 = vadd.f32 %v968_v49, %v938_v47 }
 0x188   : > { %v899_v39 = vadd.f32 %v898_v42, %v1784_v34  ;;  %v970_v53 = vadd.f32 %v969_v51, %v939_v14 }
 0x18a   : > { %v900_v45 = vadd.f32 %v899_v39, %v1787_v26  ;;  %v971_v56 = vadd.f32 %v970_v53, %v940_v52 }
 0x18c   : > { %v901_v48 = vadd.f32 %v900_v45, %v1790_v30  ;;  %v972_v63 = vadd.f32 %v971_v56, %v941_v54 }
 0x18e   : > { %v902_v55 = vadd.f32 %v901_v48, %v1793_v43  ;;  %v973_v3 = vadd.f32 %v972_v63, %v942_v60 }
 0x190   : > { %v903_v58 = vadd.f32 %v902_v55, %v1796_v50  ;;  %v974_v26 = vadd.f32 %v973_v3, %v943_v1 }
 0x192   : > { %v904_v61 = vadd.f32 %v903_v58, %v1799_v41  ;;  %v975_v8 = vadd.f32 %v974_v26, %v944_v4 }
 0x194   : > { %v905_v28 = vadd.f32 %v904_v61, %v1802_v46  ;;  %v976_v15 = vadd.f32 %v975_v8, %v945_v6 }
 0x196   : > { %v906_v34 = vadd.f32 %v905_v28, %v1805_v59  ;;  %v977_v19 = vadd.f32 %v976_v15, %v946_v12 }
 0x198   : > { %v907_v5 = vrot.slane %v906_v34, 4  ;;  %v978_v20 = vadd.f32 %v977_v19, %v947_v17 }
 0x19a   : > { %v908_v30 = vadd.f32 %v907_v5, %v906_v34  ;;  %v979_v0 = vrot.slane %v978_v20, 4 }
 0x19c   : > { %v909_v43 = vrot.slane %v908_v30, 2  ;;  %v980_v23 = vadd.f32 %v979_v0, %v978_v20 }
 0x19e   : > { %v910_v50 = vadd.f32 %v909_v43, %v908_v30  ;;  %v981_v24 = vrot.slane %v980_v23, 2 }
 0x1a0   : > { %v911_v21 = vrot.slane %v910_v50, 1  ;;  %v982_v7 = vadd.f32 %v981_v24, %v980_v23 }
 0x1a2   : > { %v912_v41 = vadd.f32 %v911_v21, %v910_v50  ;;  %v983_v46 = vrot.slane %v982_v7, 1 }
 0x1a4   : > { %v913_v2 = vadd.f32 %v912_v41, %v875_v22  ;;  %v984_v31 = vadd.f32 %v983_v46, %v982_v7 }
 0x1a6   : > { %914 = vst [vmem:[%s1596_s25] sm:$0x1] %v913_v2  ;;  %v985_v27 = vadd.f32 %v984_v31, %v915_v57 }
 0x1a8   : > { %986 = vst [vmem:[%s1602_s28] sm:$0x1] %v985_v27 }
 0x1a9 PF: > { %s16_s20 = sadd.s32 1, %s1484_s20   ;;  %s1877_s18 = smov %s1480_s19 }
 0x1aa   : > { %p13_p6 = scmp.ge.s32.totalorder %s16_s20, 4   ;;  %s1878_s19 = smov %s1880_s21 }
 0x1ac   :  { %15 = sbr.rel (!%p13_p6) target bundleno = 2 (0x2), region = 98 }

</bundles_post_ra>
